<compile_context>
chip_gen: v7x
topology: tpu7x:2x2x1
jax: 0.10.0
libtpu: 0.0.40
codegen_flags: <defaults>
</compile_context>

<pallas_src>
import functools
import math

import jax
import jax.numpy as jnp
from jax.experimental import pallas as pl
from jax.experimental.pallas import tpu as pltpu


# ----------------------------------------------------------------------------
# In-kernel helper: one multi-head AttentionLayer on 2-D (single-batch) operands,
# with the head axis batched through 3-D dot_generals.
# ----------------------------------------------------------------------------
def _mha(q, kv, wq, bq, wk, bk, wv, bv, wo, bo):
    """q: (L, dm) f32, kv: (S, dm) f32.
    wq/wk/wv: (H, dm, dk|dv) bf16, bq/bk/bv: (H, 1, dk|dv) f32,
    wo: (H, dv, dm) bf16, bo: (1, dm) f32.  Returns (L, dm) f32."""
    H, dm, dk = wq.shape
    L = q.shape[0]
    S = kv.shape[0]
    scale = 1.0 / math.sqrt(dk)

    # Broadcast activations over the head axis once (hoisted, not in any loop).
    qh = jnp.broadcast_to(q.astype(jnp.bfloat16), (H, L, dm))
    kvh = jnp.broadcast_to(kv.astype(jnp.bfloat16), (H, S, dm))

    # Batched matmul: contract lhs minor dim with rhs dim 1, batch over the head axis.
    bmm = (((2,), (1,)), ((0,), (0,)))
    Q = jax.lax.dot_general(qh, wq, bmm, preferred_element_type=jnp.float32) + bq   # (H, L, dk)
    K = jax.lax.dot_general(kvh, wk, bmm, preferred_element_type=jnp.float32) + bk  # (H, S, dk)
    V = jax.lax.dot_general(kvh, wv, bmm, preferred_element_type=jnp.float32) + bv  # (H, S, dv)

    # scores: (H, L, S)  ('hld,hsd->hls')
    qk = (((2,), (2,)), ((0,), (0,)))
    scores = jax.lax.dot_general(Q.astype(jnp.bfloat16), K.astype(jnp.bfloat16), qk,
                                 preferred_element_type=jnp.float32) * scale

    # Softmax in f32; the divide goes to the EUP via approximate reciprocal.
    m = jnp.max(scores, axis=-1, keepdims=True)
    e = jnp.exp(scores - m)
    attn = e * pl.reciprocal(jnp.sum(e, axis=-1, keepdims=True), approx=True)

    ctx = jax.lax.dot_general(attn.astype(jnp.bfloat16), V.astype(jnp.bfloat16), bmm,
                              preferred_element_type=jnp.float32)                    # (H, L, dv)
    out_h = jax.lax.dot_general(ctx.astype(jnp.bfloat16), wo, bmm,
                                preferred_element_type=jnp.float32)                  # (H, L, dm)
    # Summing the per-head projections == out_projection(concat(heads)).
    return jnp.sum(out_h, axis=0) + bo                                               # (L, dm)


# ----------------------------------------------------------------------------
# Fused kernel: both AttentionLayers for one batch item.  Inputs already arrive
# in the permuted (D, length) layout; the output is written back in that same
# lane-dense layout (the wrapper does the cheap final permute).
# ----------------------------------------------------------------------------
def fused_cross_dim_kernel(xp_ref, router_ref,
                           swq, sbq, swk, sbk, swv, sbv, swo, sbo,
                           rwq, rbq, rwk, rbk, rwv, rbv, rwo, rbo,
                           o_ref):
    x_p = xp_ref[0]                # (D, length) f32, lane-dense along length
    router_b = router_ref[0]       # (factor, length)

    # dim_sender(router, x_p, x_p) -> dim_buffer (factor, length); stays in VMEM.
    buf = _mha(router_b, x_p,
               swq[...], sbq[...], swk[...], sbk[...],
               swv[...], sbv[...], swo[...], sbo[...])

    # dim_receiver(x_p, dim_buffer, dim_buffer) -> (D, length)
    rec = _mha(x_p, buf,
               rwq[...], rbq[...], rwk[...], rbk[...],
               rwv[...], rbv[...], rwo[...], rbo[...])

    # Lane-dense store (length last); no in-kernel transpose needed.
    o_ref[0] = rec.astype(o_ref.dtype)


# ----------------------------------------------------------------------------
# Host-side parameter re-layout: PyTorch-style (in, out) weights -> per-head
# (H, in, out) bf16 weights and (H, 1, out) f32 biases.
# ----------------------------------------------------------------------------
def _prep_params(params, n_heads):
    wq, bq, wk, bk, wv, bv, wo, bo = params
    dm = wq.shape[0]
    dk = wq.shape[1] // n_heads
    dv = wv.shape[1] // n_heads

    def w_heads(w, d):
        return jnp.transpose(w.reshape(dm, n_heads, d), (1, 0, 2)).astype(jnp.bfloat16)

    def b_heads(b, d):
        return b.reshape(n_heads, 1, d).astype(jnp.float32)

    return (w_heads(wq, dk), b_heads(bq, dk),
            w_heads(wk, dk), b_heads(bk, dk),
            w_heads(wv, dv), b_heads(bv, dv),
            wo.reshape(n_heads, dv, dm).astype(jnp.bfloat16),
            bo.astype(jnp.float32))


# ----------------------------------------------------------------------------
# Cross_dim_AttentionLayer forward: single fused pallas_call, grid over batch.
# ----------------------------------------------------------------------------
def cross_dim_attention(x, router, sender_params, receiver_params, n_heads):
    B, length, D = x.shape
    _, factor, _ = router.shape
    sp = _prep_params(sender_params, n_heads)
    rp = _prep_params(receiver_params, n_heads)

    # Layout plumbing in the wrapper: keeps every kernel operand lane-dense along
    # `length` and removes both in-kernel transposes.
    x_p = jnp.transpose(x, (0, 2, 1))            # (B, D, length)

    def rep(a):
        # Full-array (grid-invariant) block: revisited every step, DMA'd once.
        return pl.BlockSpec(a.shape, lambda b: (0,) * a.ndim)

    in_specs = [pl.BlockSpec((1, D, length), lambda b: (b, 0, 0)),
                pl.BlockSpec((1, factor, length), lambda b: (b, 0, 0))]
    in_specs += [rep(a) for a in sp]
    in_specs += [rep(a) for a in rp]

    rec = pl.pallas_call(
        fused_cross_dim_kernel,
        out_shape=jax.ShapeDtypeStruct((B, D, length), jnp.float32),
        grid_spec=pltpu.PrefetchScalarGridSpec(
            num_scalar_prefetch=0,
            grid=(B,),
            in_specs=in_specs,
            out_specs=pl.BlockSpec((1, D, length), lambda b: (b, 0, 0)),
        ),
        compiler_params=pltpu.CompilerParams(dimension_semantics=("parallel",)),
    )(x_p, router, *sp, *rp)

    # Back to module layout (B, length, D).
    return jnp.transpose(rec, (0, 2, 1))


# ----------------------------------------------------------------------------
# Parameter construction (deterministic, synthetic; PyTorch Linear stored as (in, out)).
# ----------------------------------------------------------------------------
def make_attention_params(key, d_model, n_heads):
    d_keys = d_model // n_heads
    d_values = d_model // n_heads
    ks = jax.random.split(key, 8)
    s = 0.1
    wq = s * jax.random.normal(ks[0], (d_model, d_keys * n_heads), jnp.float32)
    bq = s * jax.random.normal(ks[1], (1, d_keys * n_heads), jnp.float32)
    wk = s * jax.random.normal(ks[2], (d_model, d_keys * n_heads), jnp.float32)
    bk = s * jax.random.normal(ks[3], (1, d_keys * n_heads), jnp.float32)
    wv = s * jax.random.normal(ks[4], (d_model, d_values * n_heads), jnp.float32)
    bv = s * jax.random.normal(ks[5], (1, d_values * n_heads), jnp.float32)
    wo = s * jax.random.normal(ks[6], (d_values * n_heads, d_model), jnp.float32)
    bo = s * jax.random.normal(ks[7], (1, d_model), jnp.float32)
    return (wq, bq, wk, bk, wv, bv, wo, bo)


# ----------------------------------------------------------------------------
# Pure-JAX f32 reference (mirrors the PyTorch math).
# ----------------------------------------------------------------------------
def attention_layer_ref(q, k, v, params, n_heads):
    wq, bq, wk, bk, wv, bv, wo, bo = params
    B, L, _ = q.shape
    _, S, _ = k.shape
    dk = wq.shape[1] // n_heads
    Q = (q @ wq + bq).reshape(B, L, n_heads, dk)
    K = (k @ wk + bk).reshape(B, S, n_heads, dk)
    V = (v @ wv + bv).reshape(B, S, n_heads, dk)
    scores = jnp.einsum('blhe,bshe->bhls', Q, K) / math.sqrt(dk)
    A = jax.nn.softmax(scores, axis=-1)
    out = jnp.einsum('bhls,bshd->blhd', A, V).reshape(B, L, -1)
    return out @ wo + bo


def cross_dim_attention_ref(x, router, sender_params, receiver_params, n_heads):
    x_p = jnp.transpose(x, (0, 2, 1))
    buf = attention_layer_ref(router, x_p, x_p, sender_params, n_heads)
    rec = attention_layer_ref(x_p, buf, buf, receiver_params, n_heads)
    return jnp.transpose(rec, (0, 2, 1))


if __name__ == "__main__":
    # Small, module-consistent shapes.
    B = 2          # batch
    length = 32    # d_model of the inner attention layers
    D = 8          # data dim (sequence axis for the cross-dim attention)
    factor = 4     # number of router tokens
    n_heads = 4

    key = jax.random.PRNGKey(0)
    k_x, k_router, k_send, k_recv = jax.random.split(key, 4)

    x = jax.random.normal(k_x, (B, length, D), jnp.float32)
    router = jax.random.normal(k_router, (B, factor, length), jnp.float32)
    sender_params = make_attention_params(k_send, length, n_heads)
    receiver_params = make_attention_params(k_recv, length, n_heads)

    fn = jax.jit(functools.partial(cross_dim_attention, n_heads=n_heads))
    out = fn(x, router, sender_params, receiver_params)
    out = jax.block_until_ready(out)

    ref = cross_dim_attention_ref(x, router, sender_params, receiver_params, n_heads)
    assert out.shape == (B, length, D), out.shape
    # bf16 MXU operands (softmax / accumulation in f32) -> slightly looser tolerance.
    assert jnp.allclose(out, ref, rtol=2e-2, atol=2e-2), "mismatch vs reference"

    print("KERNEL_OK")
</pallas_src>

<mosaic_0001>
module attributes {stable_mosaic.version = 11 : i64} {
  func.func @fused_cross_dim_kernel(%arg0: i32, %arg1: memref<1x8x32xf32, #tpu.memory_space<vmem>>, %arg2: memref<1x4x32xf32, #tpu.memory_space<vmem>>, %arg3: memref<4x32x8xbf16, #tpu.memory_space<vmem>>, %arg4: memref<4x1x8xf32, #tpu.memory_space<vmem>>, %arg5: memref<4x32x8xbf16, #tpu.memory_space<vmem>>, %arg6: memref<4x1x8xf32, #tpu.memory_space<vmem>>, %arg7: memref<4x32x8xbf16, #tpu.memory_space<vmem>>, %arg8: memref<4x1x8xf32, #tpu.memory_space<vmem>>, %arg9: memref<4x8x32xbf16, #tpu.memory_space<vmem>>, %arg10: memref<1x32xf32, #tpu.memory_space<vmem>>, %arg11: memref<4x32x8xbf16, #tpu.memory_space<vmem>>, %arg12: memref<4x1x8xf32, #tpu.memory_space<vmem>>, %arg13: memref<4x32x8xbf16, #tpu.memory_space<vmem>>, %arg14: memref<4x1x8xf32, #tpu.memory_space<vmem>>, %arg15: memref<4x32x8xbf16, #tpu.memory_space<vmem>>, %arg16: memref<4x1x8xf32, #tpu.memory_space<vmem>>, %arg17: memref<4x8x32xbf16, #tpu.memory_space<vmem>>, %arg18: memref<1x32xf32, #tpu.memory_space<vmem>>, %arg19: memref<1x8x32xf32, #tpu.memory_space<vmem>>) attributes {dimension_semantics = [#tpu.dimension_semantics<parallel>], iteration_bounds = array<i64: 2>, scalar_prefetch = 0 : i64, scratch_operands = 0 : i64, tpu.core_type = #tpu.core_type<tc>, window_params = [{transform_indices = @transform_0, window_bounds = array<i64: 1, 8, 32>}, {transform_indices = @transform_1, window_bounds = array<i64: 1, 4, 32>}, {pipeline_mode = #tpu.pipeline_mode<synchronous>, transform_indices = @transform_2, window_bounds = array<i64: 4, 32, 8>}, {pipeline_mode = #tpu.pipeline_mode<synchronous>, transform_indices = @transform_3, window_bounds = array<i64: 4, 1, 8>}, {pipeline_mode = #tpu.pipeline_mode<synchronous>, transform_indices = @transform_4, window_bounds = array<i64: 4, 32, 8>}, {pipeline_mode = #tpu.pipeline_mode<synchronous>, transform_indices = @transform_5, window_bounds = array<i64: 4, 1, 8>}, {pipeline_mode = #tpu.pipeline_mode<synchronous>, transform_indices = @transform_6, window_bounds = array<i64: 4, 32, 8>}, {pipeline_mode = #tpu.pipeline_mode<synchronous>, transform_indices = @transform_7, window_bounds = array<i64: 4, 1, 8>}, {pipeline_mode = #tpu.pipeline_mode<synchronous>, transform_indices = @transform_8, window_bounds = array<i64: 4, 8, 32>}, {pipeline_mode = #tpu.pipeline_mode<synchronous>, transform_indices = @transform_9, window_bounds = array<i64: 1, 32>}, {pipeline_mode = #tpu.pipeline_mode<synchronous>, transform_indices = @transform_10, window_bounds = array<i64: 4, 32, 8>}, {pipeline_mode = #tpu.pipeline_mode<synchronous>, transform_indices = @transform_11, window_bounds = array<i64: 4, 1, 8>}, {pipeline_mode = #tpu.pipeline_mode<synchronous>, transform_indices = @transform_12, window_bounds = array<i64: 4, 32, 8>}, {pipeline_mode = #tpu.pipeline_mode<synchronous>, transform_indices = @transform_13, window_bounds = array<i64: 4, 1, 8>}, {pipeline_mode = #tpu.pipeline_mode<synchronous>, transform_indices = @transform_14, window_bounds = array<i64: 4, 32, 8>}, {pipeline_mode = #tpu.pipeline_mode<synchronous>, transform_indices = @transform_15, window_bounds = array<i64: 4, 1, 8>}, {pipeline_mode = #tpu.pipeline_mode<synchronous>, transform_indices = @transform_16, window_bounds = array<i64: 4, 8, 32>}, {pipeline_mode = #tpu.pipeline_mode<synchronous>, transform_indices = @transform_17, window_bounds = array<i64: 1, 32>}, {transform_indices = @transform_18, window_bounds = array<i64: 1, 8, 32>}]} {
    %c0 = arith.constant 0 : index
    %c0_0 = arith.constant 0 : index
    %c0_1 = arith.constant 0 : index
    %0 = vector.load %arg1[%c0, %c0_0, %c0_1] : memref<1x8x32xf32, #tpu.memory_space<vmem>>, vector<1x8x32xf32>
    %1 = vector.shape_cast %0 : vector<1x8x32xf32> to vector<8x32xf32>
    %c0_2 = arith.constant 0 : index
    %c0_3 = arith.constant 0 : index
    %c0_4 = arith.constant 0 : index
    %2 = vector.load %arg2[%c0_2, %c0_3, %c0_4] : memref<1x4x32xf32, #tpu.memory_space<vmem>>, vector<1x4x32xf32>
    %3 = vector.shape_cast %2 : vector<1x4x32xf32> to vector<4x32xf32>
    %c0_5 = arith.constant 0 : index
    %c0_6 = arith.constant 0 : index
    %c0_7 = arith.constant 0 : index
    %4 = vector.load %arg3[%c0_5, %c0_6, %c0_7] : memref<4x32x8xbf16, #tpu.memory_space<vmem>>, vector<4x32x8xbf16>
    %c0_8 = arith.constant 0 : index
    %c0_9 = arith.constant 0 : index
    %c0_10 = arith.constant 0 : index
    %5 = vector.load %arg4[%c0_8, %c0_9, %c0_10] : memref<4x1x8xf32, #tpu.memory_space<vmem>>, vector<4x1x8xf32>
    %c0_11 = arith.constant 0 : index
    %c0_12 = arith.constant 0 : index
    %c0_13 = arith.constant 0 : index
    %6 = vector.load %arg5[%c0_11, %c0_12, %c0_13] : memref<4x32x8xbf16, #tpu.memory_space<vmem>>, vector<4x32x8xbf16>
    %c0_14 = arith.constant 0 : index
    %c0_15 = arith.constant 0 : index
    %c0_16 = arith.constant 0 : index
    %7 = vector.load %arg6[%c0_14, %c0_15, %c0_16] : memref<4x1x8xf32, #tpu.memory_space<vmem>>, vector<4x1x8xf32>
    %c0_17 = arith.constant 0 : index
    %c0_18 = arith.constant 0 : index
    %c0_19 = arith.constant 0 : index
    %8 = vector.load %arg7[%c0_17, %c0_18, %c0_19] : memref<4x32x8xbf16, #tpu.memory_space<vmem>>, vector<4x32x8xbf16>
    %c0_20 = arith.constant 0 : index
    %c0_21 = arith.constant 0 : index
    %c0_22 = arith.constant 0 : index
    %9 = vector.load %arg8[%c0_20, %c0_21, %c0_22] : memref<4x1x8xf32, #tpu.memory_space<vmem>>, vector<4x1x8xf32>
    %c0_23 = arith.constant 0 : index
    %c0_24 = arith.constant 0 : index
    %c0_25 = arith.constant 0 : index
    %10 = vector.load %arg9[%c0_23, %c0_24, %c0_25] : memref<4x8x32xbf16, #tpu.memory_space<vmem>>, vector<4x8x32xbf16>
    %c0_26 = arith.constant 0 : index
    %c0_27 = arith.constant 0 : index
    %11 = vector.load %arg10[%c0_26, %c0_27] : memref<1x32xf32, #tpu.memory_space<vmem>>, vector<1x32xf32>
    %12 = arith.truncf %3 : vector<4x32xf32> to vector<4x32xbf16>
    %13 = vector.shape_cast %12 : vector<4x32xbf16> to vector<1x4x32xbf16>
    %14 = vector.broadcast %13 : vector<1x4x32xbf16> to vector<4x4x32xbf16>
    %15 = arith.truncf %1 : vector<8x32xf32> to vector<8x32xbf16>
    %16 = vector.shape_cast %15 : vector<8x32xbf16> to vector<1x8x32xbf16>
    %17 = vector.broadcast %16 : vector<1x8x32xbf16> to vector<4x8x32xbf16>
    %cst = arith.constant dense<0.000000e+00> : vector<4x4x8xf32>
    %18 = tpu.matmul %14, %4, %cst {dimension_numbers = #tpu.dot_dimension_numbers<[2], [1], [1], [2], [0, 0, 0, 1, 1, 2], [0], [0]>} : vector<4x4x32xbf16>, vector<4x32x8xbf16>, vector<4x4x8xf32> -> vector<4x4x8xf32>
    %19 = vector.broadcast %5 : vector<4x1x8xf32> to vector<4x4x8xf32>
    %20 = arith.addf %18, %19 : vector<4x4x8xf32>
    %cst_28 = arith.constant dense<0.000000e+00> : vector<4x8x8xf32>
    %21 = tpu.matmul %17, %6, %cst_28 {dimension_numbers = #tpu.dot_dimension_numbers<[2], [1], [1], [2], [0, 0, 0, 1, 1, 2], [0], [0]>} : vector<4x8x32xbf16>, vector<4x32x8xbf16>, vector<4x8x8xf32> -> vector<4x8x8xf32>
    %22 = vector.broadcast %7 : vector<4x1x8xf32> to vector<4x8x8xf32>
    %23 = arith.addf %21, %22 : vector<4x8x8xf32>
    %cst_29 = arith.constant dense<0.000000e+00> : vector<4x8x8xf32>
    %24 = tpu.matmul %17, %8, %cst_29 {dimension_numbers = #tpu.dot_dimension_numbers<[2], [1], [1], [2], [0, 0, 0, 1, 1, 2], [0], [0]>} : vector<4x8x32xbf16>, vector<4x32x8xbf16>, vector<4x8x8xf32> -> vector<4x8x8xf32>
    %25 = vector.broadcast %9 : vector<4x1x8xf32> to vector<4x8x8xf32>
    %26 = arith.addf %24, %25 : vector<4x8x8xf32>
    %27 = arith.truncf %20 : vector<4x4x8xf32> to vector<4x4x8xbf16>
    %28 = arith.truncf %23 : vector<4x8x8xf32> to vector<4x8x8xbf16>
    %cst_30 = arith.constant dense<0.000000e+00> : vector<4x4x8xf32>
    %29 = tpu.matmul %27, %28, %cst_30 {dimension_numbers = #tpu.dot_dimension_numbers<[2], [2], [1], [1], [0, 0, 0, 1, 1, 1], [0], [0]>} : vector<4x4x8xbf16>, vector<4x8x8xbf16>, vector<4x4x8xf32> -> vector<4x4x8xf32>
    %cst_31 = arith.constant 0.353553385 : f32
    %30 = vector.broadcast %cst_31 : f32 to vector<4x4x8xf32>
    %31 = arith.mulf %29, %30 : vector<4x4x8xf32>
    %cst_32 = arith.constant dense<0xFF800000> : vector<4x4xf32>
    %32 = vector.multi_reduction <maximumf>, %31, %cst_32 [2] : vector<4x4x8xf32> to vector<4x4xf32>
    %33 = vector.shape_cast %32 : vector<4x4xf32> to vector<4x4x1xf32>
    %34 = vector.broadcast %33 : vector<4x4x1xf32> to vector<4x4x8xf32>
    %35 = arith.subf %31, %34 : vector<4x4x8xf32>
    %36 = math.exp %35 : vector<4x4x8xf32>
    %cst_33 = arith.constant dense<0.000000e+00> : vector<4x4xf32>
    %37 = vector.multi_reduction <add>, %36, %cst_33 [2] : vector<4x4x8xf32> to vector<4x4xf32>
    %38 = vector.shape_cast %37 : vector<4x4xf32> to vector<4x4x1xf32>
    %39 = tpu.reciprocal %38 {approx = true} : vector<4x4x1xf32> -> vector<4x4x1xf32>
    %40 = vector.broadcast %39 : vector<4x4x1xf32> to vector<4x4x8xf32>
    %41 = arith.mulf %36, %40 : vector<4x4x8xf32>
    %42 = arith.truncf %41 : vector<4x4x8xf32> to vector<4x4x8xbf16>
    %43 = arith.truncf %26 : vector<4x8x8xf32> to vector<4x8x8xbf16>
    %cst_34 = arith.constant dense<0.000000e+00> : vector<4x4x8xf32>
    %44 = tpu.matmul %42, %43, %cst_34 {dimension_numbers = #tpu.dot_dimension_numbers<[2], [1], [1], [2], [0, 0, 0, 1, 1, 2], [0], [0]>} : vector<4x4x8xbf16>, vector<4x8x8xbf16>, vector<4x4x8xf32> -> vector<4x4x8xf32>
    %45 = arith.truncf %44 : vector<4x4x8xf32> to vector<4x4x8xbf16>
    %cst_35 = arith.constant dense<0.000000e+00> : vector<4x4x32xf32>
    %46 = tpu.matmul %45, %10, %cst_35 {dimension_numbers = #tpu.dot_dimension_numbers<[2], [1], [1], [2], [0, 0, 0, 1, 1, 2], [0], [0]>} : vector<4x4x8xbf16>, vector<4x8x32xbf16>, vector<4x4x32xf32> -> vector<4x4x32xf32>
    %cst_36 = arith.constant dense<0.000000e+00> : vector<4x32xf32>
    %47 = vector.multi_reduction <add>, %46, %cst_36 [0] : vector<4x4x32xf32> to vector<4x32xf32>
    %48 = vector.broadcast %11 : vector<1x32xf32> to vector<4x32xf32>
    %49 = arith.addf %47, %48 : vector<4x32xf32>
    %c0_37 = arith.constant 0 : index
    %c0_38 = arith.constant 0 : index
    %c0_39 = arith.constant 0 : index
    %50 = vector.load %arg11[%c0_37, %c0_38, %c0_39] : memref<4x32x8xbf16, #tpu.memory_space<vmem>>, vector<4x32x8xbf16>
    %c0_40 = arith.constant 0 : index
    %c0_41 = arith.constant 0 : index
    %c0_42 = arith.constant 0 : index
    %51 = vector.load %arg12[%c0_40, %c0_41, %c0_42] : memref<4x1x8xf32, #tpu.memory_space<vmem>>, vector<4x1x8xf32>
    %c0_43 = arith.constant 0 : index
    %c0_44 = arith.constant 0 : index
    %c0_45 = arith.constant 0 : index
    %52 = vector.load %arg13[%c0_43, %c0_44, %c0_45] : memref<4x32x8xbf16, #tpu.memory_space<vmem>>, vector<4x32x8xbf16>
    %c0_46 = arith.constant 0 : index
    %c0_47 = arith.constant 0 : index
    %c0_48 = arith.constant 0 : index
    %53 = vector.load %arg14[%c0_46, %c0_47, %c0_48] : memref<4x1x8xf32, #tpu.memory_space<vmem>>, vector<4x1x8xf32>
    %c0_49 = arith.constant 0 : index
    %c0_50 = arith.constant 0 : index
    %c0_51 = arith.constant 0 : index
    %54 = vector.load %arg15[%c0_49, %c0_50, %c0_51] : memref<4x32x8xbf16, #tpu.memory_space<vmem>>, vector<4x32x8xbf16>
    %c0_52 = arith.constant 0 : index
    %c0_53 = arith.constant 0 : index
    %c0_54 = arith.constant 0 : index
    %55 = vector.load %arg16[%c0_52, %c0_53, %c0_54] : memref<4x1x8xf32, #tpu.memory_space<vmem>>, vector<4x1x8xf32>
    %c0_55 = arith.constant 0 : index
    %c0_56 = arith.constant 0 : index
    %c0_57 = arith.constant 0 : index
    %56 = vector.load %arg17[%c0_55, %c0_56, %c0_57] : memref<4x8x32xbf16, #tpu.memory_space<vmem>>, vector<4x8x32xbf16>
    %c0_58 = arith.constant 0 : index
    %c0_59 = arith.constant 0 : index
    %57 = vector.load %arg18[%c0_58, %c0_59] : memref<1x32xf32, #tpu.memory_space<vmem>>, vector<1x32xf32>
    %58 = arith.truncf %1 : vector<8x32xf32> to vector<8x32xbf16>
    %59 = vector.shape_cast %58 : vector<8x32xbf16> to vector<1x8x32xbf16>
    %60 = vector.broadcast %59 : vector<1x8x32xbf16> to vector<4x8x32xbf16>
    %61 = arith.truncf %49 : vector<4x32xf32> to vector<4x32xbf16>
    %62 = vector.shape_cast %61 : vector<4x32xbf16> to vector<1x4x32xbf16>
    %63 = vector.broadcast %62 : vector<1x4x32xbf16> to vector<4x4x32xbf16>
    %cst_60 = arith.constant dense<0.000000e+00> : vector<4x8x8xf32>
    %64 = tpu.matmul %60, %50, %cst_60 {dimension_numbers = #tpu.dot_dimension_numbers<[2], [1], [1], [2], [0, 0, 0, 1, 1, 2], [0], [0]>} : vector<4x8x32xbf16>, vector<4x32x8xbf16>, vector<4x8x8xf32> -> vector<4x8x8xf32>
    %65 = vector.broadcast %51 : vector<4x1x8xf32> to vector<4x8x8xf32>
    %66 = arith.addf %64, %65 : vector<4x8x8xf32>
    %cst_61 = arith.constant dense<0.000000e+00> : vector<4x4x8xf32>
    %67 = tpu.matmul %63, %52, %cst_61 {dimension_numbers = #tpu.dot_dimension_numbers<[2], [1], [1], [2], [0, 0, 0, 1, 1, 2], [0], [0]>} : vector<4x4x32xbf16>, vector<4x32x8xbf16>, vector<4x4x8xf32> -> vector<4x4x8xf32>
    %68 = vector.broadcast %53 : vector<4x1x8xf32> to vector<4x4x8xf32>
    %69 = arith.addf %67, %68 : vector<4x4x8xf32>
    %cst_62 = arith.constant dense<0.000000e+00> : vector<4x4x8xf32>
    %70 = tpu.matmul %63, %54, %cst_62 {dimension_numbers = #tpu.dot_dimension_numbers<[2], [1], [1], [2], [0, 0, 0, 1, 1, 2], [0], [0]>} : vector<4x4x32xbf16>, vector<4x32x8xbf16>, vector<4x4x8xf32> -> vector<4x4x8xf32>
    %71 = vector.broadcast %55 : vector<4x1x8xf32> to vector<4x4x8xf32>
    %72 = arith.addf %70, %71 : vector<4x4x8xf32>
    %73 = arith.truncf %66 : vector<4x8x8xf32> to vector<4x8x8xbf16>
    %74 = arith.truncf %69 : vector<4x4x8xf32> to vector<4x4x8xbf16>
    %cst_63 = arith.constant dense<0.000000e+00> : vector<4x8x4xf32>
    %75 = tpu.matmul %73, %74, %cst_63 {dimension_numbers = #tpu.dot_dimension_numbers<[2], [2], [1], [1], [0, 0, 0, 1, 1, 1], [0], [0]>} : vector<4x8x8xbf16>, vector<4x4x8xbf16>, vector<4x8x4xf32> -> vector<4x8x4xf32>
    %cst_64 = arith.constant 0.353553385 : f32
    %76 = vector.broadcast %cst_64 : f32 to vector<4x8x4xf32>
    %77 = arith.mulf %75, %76 : vector<4x8x4xf32>
    %cst_65 = arith.constant dense<0xFF800000> : vector<4x8xf32>
    %78 = vector.multi_reduction <maximumf>, %77, %cst_65 [2] : vector<4x8x4xf32> to vector<4x8xf32>
    %79 = vector.shape_cast %78 : vector<4x8xf32> to vector<4x8x1xf32>
    %80 = vector.broadcast %79 : vector<4x8x1xf32> to vector<4x8x4xf32>
    %81 = arith.subf %77, %80 : vector<4x8x4xf32>
    %82 = math.exp %81 : vector<4x8x4xf32>
    %cst_66 = arith.constant dense<0.000000e+00> : vector<4x8xf32>
    %83 = vector.multi_reduction <add>, %82, %cst_66 [2] : vector<4x8x4xf32> to vector<4x8xf32>
    %84 = vector.shape_cast %83 : vector<4x8xf32> to vector<4x8x1xf32>
    %85 = tpu.reciprocal %84 {approx = true} : vector<4x8x1xf32> -> vector<4x8x1xf32>
    %86 = vector.broadcast %85 : vector<4x8x1xf32> to vector<4x8x4xf32>
    %87 = arith.mulf %82, %86 : vector<4x8x4xf32>
    %88 = arith.truncf %87 : vector<4x8x4xf32> to vector<4x8x4xbf16>
    %89 = arith.truncf %72 : vector<4x4x8xf32> to vector<4x4x8xbf16>
    %cst_67 = arith.constant dense<0.000000e+00> : vector<4x8x8xf32>
    %90 = tpu.matmul %88, %89, %cst_67 {dimension_numbers = #tpu.dot_dimension_numbers<[2], [1], [1], [2], [0, 0, 0, 1, 1, 2], [0], [0]>} : vector<4x8x4xbf16>, vector<4x4x8xbf16>, vector<4x8x8xf32> -> vector<4x8x8xf32>
    %91 = arith.truncf %90 : vector<4x8x8xf32> to vector<4x8x8xbf16>
    %cst_68 = arith.constant dense<0.000000e+00> : vector<4x8x32xf32>
    %92 = tpu.matmul %91, %56, %cst_68 {dimension_numbers = #tpu.dot_dimension_numbers<[2], [1], [1], [2], [0, 0, 0, 1, 1, 2], [0], [0]>} : vector<4x8x8xbf16>, vector<4x8x32xbf16>, vector<4x8x32xf32> -> vector<4x8x32xf32>
    %cst_69 = arith.constant dense<0.000000e+00> : vector<8x32xf32>
    %93 = vector.multi_reduction <add>, %92, %cst_69 [0] : vector<4x8x32xf32> to vector<8x32xf32>
    %94 = vector.broadcast %57 : vector<1x32xf32> to vector<8x32xf32>
    %95 = arith.addf %93, %94 : vector<8x32xf32>
    %c0_70 = arith.constant 0 : index
    %c0_71 = arith.constant 0 : index
    %c0_72 = arith.constant 0 : index
    %96 = vector.load %arg19[%c0_70, %c0_71, %c0_72] : memref<1x8x32xf32, #tpu.memory_space<vmem>>, vector<1x8x32xf32>
    %97 = vector.shape_cast %96 : vector<1x8x32xf32> to vector<8x32xf32>
    %98 = vector.shape_cast %95 : vector<8x32xf32> to vector<1x8x32xf32>
    tpu.vector_store %arg19[%c0_70, %c0_71, %c0_72], %98 {strides = array<i32>} : memref<1x8x32xf32, #tpu.memory_space<vmem>>, vector<1x8x32xf32>,
    return
  }
  func.func @transform_0(%arg0: i32) -> (i32, i32, i32) {
    %c0_i32 = arith.constant 0 : i32
    %c0_i32_0 = arith.constant 0 : i32
    %c0_i32_1 = arith.constant 0 : i32
    return %arg0, %c0_i32, %c0_i32_0 : i32, i32, i32
  }
  func.func @transform_1(%arg0: i32) -> (i32, i32, i32) {
    %c0_i32 = arith.constant 0 : i32
    %c0_i32_0 = arith.constant 0 : i32
    %c0_i32_1 = arith.constant 0 : i32
    return %arg0, %c0_i32, %c0_i32_0 : i32, i32, i32
  }
  func.func @transform_2(%arg0: i32) -> (i32, i32, i32) {
    %c0_i32 = arith.constant 0 : i32
    %c0_i32_0 = arith.constant 0 : i32
    %c0_i32_1 = arith.constant 0 : i32
    %c0_i32_2 = arith.constant 0 : i32
    return %c0_i32, %c0_i32_0, %c0_i32_1 : i32, i32, i32
  }
  func.func @transform_3(%arg0: i32) -> (i32, i32, i32) {
    %c0_i32 = arith.constant 0 : i32
    %c0_i32_0 = arith.constant 0 : i32
    %c0_i32_1 = arith.constant 0 : i32
    %c0_i32_2 = arith.constant 0 : i32
    return %c0_i32, %c0_i32_0, %c0_i32_1 : i32, i32, i32
  }
  func.func @transform_4(%arg0: i32) -> (i32, i32, i32) {
    %c0_i32 = arith.constant 0 : i32
    %c0_i32_0 = arith.constant 0 : i32
    %c0_i32_1 = arith.constant 0 : i32
    %c0_i32_2 = arith.constant 0 : i32
    return %c0_i32, %c0_i32_0, %c0_i32_1 : i32, i32, i32
  }
  func.func @transform_5(%arg0: i32) -> (i32, i32, i32) {
    %c0_i32 = arith.constant 0 : i32
    %c0_i32_0 = arith.constant 0 : i32
    %c0_i32_1 = arith.constant 0 : i32
    %c0_i32_2 = arith.constant 0 : i32
    return %c0_i32, %c0_i32_0, %c0_i32_1 : i32, i32, i32
  }
  func.func @transform_6(%arg0: i32) -> (i32, i32, i32) {
    %c0_i32 = arith.constant 0 : i32
    %c0_i32_0 = arith.constant 0 : i32
    %c0_i32_1 = arith.constant 0 : i32
    %c0_i32_2 = arith.constant 0 : i32
    return %c0_i32, %c0_i32_0, %c0_i32_1 : i32, i32, i32
  }
  func.func @transform_7(%arg0: i32) -> (i32, i32, i32) {
    %c0_i32 = arith.constant 0 : i32
    %c0_i32_0 = arith.constant 0 : i32
    %c0_i32_1 = arith.constant 0 : i32
    %c0_i32_2 = arith.constant 0 : i32
    return %c0_i32, %c0_i32_0, %c0_i32_1 : i32, i32, i32
  }
  func.func @transform_8(%arg0: i32) -> (i32, i32, i32) {
    %c0_i32 = arith.constant 0 : i32
    %c0_i32_0 = arith.constant 0 : i32
    %c0_i32_1 = arith.constant 0 : i32
    %c0_i32_2 = arith.constant 0 : i32
    return %c0_i32, %c0_i32_0, %c0_i32_1 : i32, i32, i32
  }
  func.func @transform_9(%arg0: i32) -> (i32, i32) {
    %c0_i32 = arith.constant 0 : i32
    %c0_i32_0 = arith.constant 0 : i32
    %c0_i32_1 = arith.constant 0 : i32
    return %c0_i32, %c0_i32_0 : i32, i32
  }
  func.func @transform_10(%arg0: i32) -> (i32, i32, i32) {
    %c0_i32 = arith.constant 0 : i32
    %c0_i32_0 = arith.constant 0 : i32
    %c0_i32_1 = arith.constant 0 : i32
    %c0_i32_2 = arith.constant 0 : i32
    return %c0_i32, %c0_i32_0, %c0_i32_1 : i32, i32, i32
  }
  func.func @transform_11(%arg0: i32) -> (i32, i32, i32) {
    %c0_i32 = arith.constant 0 : i32
    %c0_i32_0 = arith.constant 0 : i32
    %c0_i32_1 = arith.constant 0 : i32
    %c0_i32_2 = arith.constant 0 : i32
    return %c0_i32, %c0_i32_0, %c0_i32_1 : i32, i32, i32
  }
  func.func @transform_12(%arg0: i32) -> (i32, i32, i32) {
    %c0_i32 = arith.constant 0 : i32
    %c0_i32_0 = arith.constant 0 : i32
    %c0_i32_1 = arith.constant 0 : i32
    %c0_i32_2 = arith.constant 0 : i32
    return %c0_i32, %c0_i32_0, %c0_i32_1 : i32, i32, i32
  }
  func.func @transform_13(%arg0: i32) -> (i32, i32, i32) {
    %c0_i32 = arith.constant 0 : i32
    %c0_i32_0 = arith.constant 0 : i32
    %c0_i32_1 = arith.constant 0 : i32
    %c0_i32_2 = arith.constant 0 : i32
    return %c0_i32, %c0_i32_0, %c0_i32_1 : i32, i32, i32
  }
  func.func @transform_14(%arg0: i32) -> (i32, i32, i32) {
    %c0_i32 = arith.constant 0 : i32
    %c0_i32_0 = arith.constant 0 : i32
    %c0_i32_1 = arith.constant 0 : i32
    %c0_i32_2 = arith.constant 0 : i32
    return %c0_i32, %c0_i32_0, %c0_i32_1 : i32, i32, i32
  }
  func.func @transform_15(%arg0: i32) -> (i32, i32, i32) {
    %c0_i32 = arith.constant 0 : i32
    %c0_i32_0 = arith.constant 0 : i32
    %c0_i32_1 = arith.constant 0 : i32
    %c0_i32_2 = arith.constant 0 : i32
    return %c0_i32, %c0_i32_0, %c0_i32_1 : i32, i32, i32
  }
  func.func @transform_16(%arg0: i32) -> (i32, i32, i32) {
    %c0_i32 = arith.constant 0 : i32
    %c0_i32_0 = arith.constant 0 : i32
    %c0_i32_1 = arith.constant 0 : i32
    %c0_i32_2 = arith.constant 0 : i32
    return %c0_i32, %c0_i32_0, %c0_i32_1 : i32, i32, i32
  }
  func.func @transform_17(%arg0: i32) -> (i32, i32) {
    %c0_i32 = arith.constant 0 : i32
    %c0_i32_0 = arith.constant 0 : i32
    %c0_i32_1 = arith.constant 0 : i32
    return %c0_i32, %c0_i32_0 : i32, i32
  }
  func.func @transform_18(%arg0: i32) -> (i32, i32, i32) {
    %c0_i32 = arith.constant 0 : i32
    %c0_i32_0 = arith.constant 0 : i32
    %c0_i32_1 = arith.constant 0 : i32
    return %arg0, %c0_i32, %c0_i32_0 : i32, i32, i32
  }
}

</mosaic_0001>

<bundles_post_ra>
// kernel: cross_dim_attention.1
= control target key start
LH: loop header
LB: loop body
LE: loop exit
PB: predicated region body
PF: predicated region fallthrough
CT: control target
= control target key end

     0   :  { %s5001_s0 = inlined_call_operand.vmem [shape: f32[2,8,32], index: 0, kind: input, shape index: {}]   ;;  %s5002_s1 = inlined_call_operand.vmem [shape: f32[2,4,32], index: 1, kind: input, shape index: {}]   ;;  %s5003_s2 = inlined_call_operand.vmem [shape: bf16[4,32,8], index: 2, kind: input, shape index: {}]   ;;  %s5004_s3 = inlined_call_operand.vmem [shape: f32[4,1,8], index: 3, kind: input, shape index: {}]   ;;  %s5005_s4 = inlined_call_operand.vmem [shape: bf16[4,32,8], index: 4, kind: input, shape index: {}]   ;;  %s5006_s5 = inlined_call_operand.vmem [shape: f32[4,1,8], index: 5, kind: input, shape index: {}]   ;;  %s5007_s6 = inlined_call_operand.vmem [shape: bf16[4,32,8], index: 6, kind: input, shape index: {}]   ;;  %s5008_s7 = inlined_call_operand.vmem [shape: f32[4,1,8], index: 7, kind: input, shape index: {}]   ;;  %s5009_s8 = inlined_call_operand.vmem [shape: bf16[4,8,32], index: 8, kind: input, shape index: {}]   ;;  %s5010_s9 = inlined_call_operand.vmem [shape: f32[1,32], index: 9, kind: input, shape index: {}]   ;;  %s5011_s10 = inlined_call_operand.vmem [shape: bf16[4,32,8], index: 10, kind: input, shape index: {}]   ;;  %s5012_s11 = inlined_call_operand.vmem [shape: f32[4,1,8], index: 11, kind: input, shape index: {}]   ;;  %s5013_s12 = inlined_call_operand.vmem [shape: bf16[4,32,8], index: 12, kind: input, shape index: {}]   ;;  %s5014_s13 = inlined_call_operand.vmem [shape: f32[4,1,8], index: 13, kind: input, shape index: {}]   ;;  %s5015_s14 = inlined_call_operand.vmem [shape: bf16[4,32,8], index: 14, kind: input, shape index: {}]   ;;  %s5016_s15 = inlined_call_operand.vmem [shape: f32[4,1,8], index: 15, kind: input, shape index: {}]   ;;  %s5017_s16 = inlined_call_operand.vmem [shape: bf16[4,8,32], index: 16, kind: input, shape index: {}]   ;;  %s5018_s17 = inlined_call_operand.vmem [shape: f32[1,32], index: 17, kind: input, shape index: {}]   ;;  %s5019_s18 = inlined_call_operand.hbm [shape: f32[2,8,32], index: 18, kind: output, shape index: {}]  }
   0x1   :  { %5027 = sst [smem:[#allocation10_spill]] %s5001_s0 }
   0x2   :  { %5028 = sst [smem:[#allocation11_spill]] %s5002_s1 }
   0x3   :  { %5029 = sst [smem:[#allocation12_spill]] %s5003_s2 }
   0x4   :  { %23 = vsyncpa [#allocation3], 0 }
   0x5   :  { %25 = vsyncpa [#allocation3 + $0x1], 0  ;;  %s4358_s27 = smov 0   ;;  %s4360_s28 = smov 0  }
   0x6   :  { %s4362_s29 = smov 0   ;;  %s4364_s30 = smov 0  }
   0x7 LB: > { %5030 = sst [smem:[#allocation5_spill]] %s4246_s27  ;;  %s4379_s0 = sadd.s32 4294967295, %s4258_s30   ;;  %s4258_s30 = sphi %s4364_s30, %s5042_s30   ;;  %s4254_s29 = sphi %s4362_s29, %s5044_s29   ;;  %s4250_s28 = sphi %s4360_s28, %s5046_s28   ;;  %s4246_s27 = sphi %s4358_s27, %s5045_s27  }
   0x8   : > { %5031 = sst [smem:[#allocation6_spill]] %s4254_s29  ;;  %s3486_s19 = sadd.s32 4294967294, %s4258_s30  }
   0x9   : > { %s4383_s1 = sadd.s32 1, %s4258_s30   ;;  %s426_s20 = sadd.s32 1, %s4254_s29 }
   0xa   : > { %5032 = sst [smem:[#allocation7_spill]] %s4383_s1  ;;  %s423_s21 = ssub.s32 %s4258_s30, %s4383_s1 }
   0xb   : > { %p436_p0 = scmp.ne.s32.totalorder %s4254_s29, %s4250_s28  ;;  %p424_p1 = scmp.eq.s32.totalorder %s423_s21, 0 }
   0xc   : > { %p437_p2 = scmp.eq.s32.totalorder %s4379_s0, 1  ;;  %p442_p3 = scmp.ne.s32.totalorder %s4250_s28, %s4246_s27 }
   0xd   : > { %p443_p4 = scmp.eq.s32.totalorder %s3486_s19, 1  ;;  %p3489_p7 = scmp.ge.s32.totalorder %s4258_s30, 1 }
   0xe   : > { %s4394_s22 = scalar_select %p424_p1, %s4254_s29, %s426_s20  }
   0xf   : > { %p4396_p5 = por %p437_p2, %p436_p0  ;;  %p4400_p6 = por %p443_p4, %p442_p3 }
  0x10   : > { %5033 = sst [smem:[#allocation8_spill]] %s4394_s22  ;;  %p523_p8 = scmp.lt.s32.totalorder %s4258_s30, 3 }
  0x11   : > { %s5035_s23 = scalar_select %p4400_p6, 1, 0 }
  0x12   : > { %p524_p9 = pnand %p3489_p7, %p523_p8 }
  0x13   : > { %5036 = sst [smem:[#allocation9_spill]] %s5035_s23  ;;  %s5037_s26 = sld [smem:[#allocation12_spill]] (!%p524_p9)  ;;  %v4260_v1 = vmov (!%p524_p9), 0.0   ;;  %vm4261_vm0 = vmmov (!%p524_p9), 0   ;;  %vm694_vm1 = vcmask (!%p524_p9), 261120   ;;  %v4124_v11 = vld [vmem:[%s5005_s4] sm:$0xff] (!%p524_p9)  }
  0x14   : > { %527 = sbr.rel (%p524_p9) target bundleno = 2459 (0x99b), region = 92  ;;  %3739 = vmatprep.subr.bf16.mxu0 (!%p524_p9), %v4260_v1  ;;  %3747 = vmatprep.subr.bf16.mxu1 (!%p524_p9), %v4260_v1  ;;  %p580_p10 = scmp.lt.s32.totalorder (!%p524_p9), %s4379_s0, 1  ;;  %v4125_v12 = vld [vmem:[%s5005_s4 + $0x10] sm:$0xff] (!%p524_p9)   ;;  %v4126_v14 = vld [vmem:[%s5005_s4 + $0x8] sm:$0xff] (!%p524_p9)   ;;  %v4127_v15 = vld [vmem:[%s5005_s4 + $0x18] sm:$0xff] (!%p524_p9)   ;;  %vm1369_vm2 = vcmask (!%p524_p9), 64512  }
  0x15   : > { %3743 = vmatprep.mubr.msk.bf16.mxu0 (!%p524_p9), %vm4261_vm0, %v4260_v1  ;;  %3751 = vmatprep.mubr.msk.bf16.mxu1 (!%p524_p9), %vm4261_vm0, %v4260_v1  ;;  %s5038_s29 = sld [smem:[#allocation11_spill]] (!%p524_p9)  ;;  %s5039_s24 = sld [smem:[#allocation10_spill]] (!%p524_p9)  ;;  %v4128_v16 = vld [vmem:[%s5005_s4 + $0x20] sm:$0xff] (!%p524_p9)   ;;  %v4129_v17 = vld [vmem:[%s5005_s4 + $0x30] sm:$0xff] (!%p524_p9)   ;;  %v4130_v19 = vld [vmem:[%s5005_s4 + $0x28] sm:$0xff] (!%p524_p9)   ;;  %vm1614_vm3 = vcmask (!%p524_p9), 1043456  }
  0x16   : > { %v4131_v20 = vld [vmem:[%s5005_s4 + $0x38] sm:$0xff] (!%p524_p9)   ;;  %v4132_v21 = vld [vmem:[%s5007_s6] sm:$0xff] (!%p524_p9)   ;;  %v4133_v22 = vld [vmem:[%s5007_s6 + $0x10] sm:$0xff] (!%p524_p9)   ;;  %vm1558_vm4 = vcmask (!%p524_p9), 60416   ;;  %vm1984_vm5 = vcmask (!%p524_p9), 257024   ;;  %vm3016_vm6 = vcmask (!%p524_p9), 1041408  }
  0x17   : > { %v4134_v23 = vld [vmem:[%s5007_s6 + $0x8] sm:$0xff] (!%p524_p9)   ;;  %v4135_v24 = vld [vmem:[%s5007_s6 + $0x18] sm:$0xff] (!%p524_p9)   ;;  %v4136_v25 = vld [vmem:[%s5007_s6 + $0x20] sm:$0xff] (!%p524_p9)   ;;  %vm2960_vm7 = vcmask (!%p524_p9), 31744   ;;  %s3616_s27 = sshll.u32 (!%p524_p9), %s4379_s0, 7 }
  0x18   : > { %v4137_v26 = vld [vmem:[%s5007_s6 + $0x30] sm:$0xff] (!%p524_p9)   ;;  %v4138_v27 = vld [vmem:[%s5007_s6 + $0x28] sm:$0xff] (!%p524_p9)   ;;  %v4139_v28 = vld [vmem:[%s5007_s6 + $0x38] sm:$0xff] (!%p524_p9)   ;;  %s4958_s25 = scalar_lea.hbm (!%p524_p9), %s5019_s18, %s3616_s27 }
  0x19   : > { %v4116_v0 = vld [vmem:[%s5037_s26] sm:$0xff] (!%p524_p9)   ;;  %v4117_v2 = vld [vmem:[%s5037_s26 + $0x10] sm:$0xff] (!%p524_p9)   ;;  %v4118_v3 = vld [vmem:[%s5037_s26 + $0x8] sm:$0xff] (!%p524_p9)  }
  0x1a   : > { %3740 = vmatpush3.bf16.msra.mxu0 (!%p524_p9), %v4116_v0  ;;  %3748 = vmatpush3.bf16.msra.mxu1 (!%p524_p9), %v4117_v2  ;;  %v4119_v4 = vld [vmem:[%s5037_s26 + $0x18] sm:$0xff] (!%p524_p9)   ;;  %v4120_v6 = vld [vmem:[%s5037_s26 + $0x20] sm:$0xff] (!%p524_p9)   ;;  %v4121_v7 = vld [vmem:[%s5037_s26 + $0x30] sm:$0xff] (!%p524_p9)  }
  0x1b   : > { %3741 = vmatprep.subr.bf16.mxu0 %v4260_v1  ;;  %3749 = vmatprep.subr.bf16.mxu1 %v4260_v1  ;;  %s581_s19 = scalar_select %p580_p10, %s4379_s0, 1  ;;  %v4122_v9 = vld [vmem:[%s5037_s26 + $0x28] sm:$0xff]   ;;  %v4123_v10 = vld [vmem:[%s5037_s26 + $0x38] sm:$0xff]   ;;  %v3509_v45 = vld [vmem:[%s5006_s5] ss:$0 sm:$0xff] }
  0x1c   : > { %v3510_v46 = vld [vmem:[%s5006_s5 + $0x1] ss:$0 sm:$0xff]  ;;  %v3493_v59 = vld [vmem:[%s5004_s3] ss:$0 sm:$0xff]  ;;  %v3511_v63 = vld [vmem:[%s5006_s5 + $0x2] ss:$0 sm:$0xff] }
  0x1d   : > { %s3492_s22 = sshll.u32 %s581_s19, 2  ;;  %v3494_v60 = vld [vmem:[%s5004_s3 + $0x1] ss:$0 sm:$0xff]  ;;  %v3512_v0 = vld [vmem:[%s5006_s5 + $0x3] ss:$0 sm:$0xff]  ;;  %s4262_s0 = smov [#allocation2]  }
  0x1e   : > { %3742 = vmatpush3.bf16.msra.mxu0 %v4118_v3  ;;  %3750 = vmatpush3.bf16.msra.mxu1 %v4119_v4  ;;  %s587_s1 = scalar_lea.vmem %s5038_s29, %s3492_s22  ;;  %s577_s22 = sand.u32 1, %s4250_s28  }
  0x1f   : > { %3755 = vmatprep.subr.bf16.mxu0 %v4260_v1  ;;  %v590_v5 = vld [vmem:[%s587_s1] sm:$0xf]  ;;  %3763 = vmatprep.subr.bf16.mxu1 %v4260_v1  ;;  %s3491_s1 = sshll.u32 %s581_s19, 3  ;;  %s3490_s20 = sshll.u32 %s577_s22, 3 }
  0x20   : > { %v656_v8 = vpack.c.bf16 %v590_v5, %v590_v5  ;;  %s583_s19 = scalar_lea.vmem %s5039_s24, %s3491_s1  ;;  %s579_s26 = scalar_lea.vmem [#allocation2], %s3490_s20 }
  0x21   : > { %v589_v13 = vld [vmem:[%s583_s19] sm:$0xff]  ;;  %s3415_s23 = sshll.u32 %s579_s26, 4  ;;  %s3402_s29 = scalar_lea.sflag [#allocation3], %s577_s22  ;;  %s4960_s23 = int_to_ptr.vmem [resolvable:$true] %s3415_s23 }
  0x22   : > { %3744 = vmatmul.mubr.msk.bf16.vlgmr.msra.gmra.mrb[0].mxu0 %vm694_vm1, %v656_v8  ;;  %3752 = vmatmul.mubr.msk.bf16.vlgmr.msra.gmra.mrb[0].mxu1 %vm694_vm1, %v656_v8  ;;  %v4484_v18 = vpack.c.bf16 %v589_v13, %v589_v13  ;;  %s4196_s21 = scalar_lea.vmem %s4960_s23, 128  ;;  %s4200_s20 = sshll.u32 %s4262_s0, 4  ;;  %s4201_s20 = int_to_ptr.vmem [resolvable:$false] %s4200_s20 }
  0x23   : > { %3756 = vmatpush3.bf16.msra.mxu0 %v4120_v6  ;;  %3764 = vmatpush3.bf16.msra.mxu1 %v4121_v7  ;;  %p4197_p11 = scmp.ne.s32.totalorder %s4960_s23, %s4196_s21  ;;  %s4202_s1 = scalar_lea.vmem %s4201_s20, 256 }
  0x24   : > { %3757 = vmatprep.subr.bf16.mxu0 %v4260_v1  ;;  %3765 = vmatprep.subr.bf16.mxu1 %v4260_v1  ;;  %p4203_p0 = scmp.lt.s32.totalorder %s4960_s23, %s4201_s20  ;;  %p4204_p1 = scmp.lt.s32.totalorder %s4202_s1, %s4196_s21 }
  0x25   : > { %3759 = vmatprep.mubr.msk.bf16.mxu0 %vm4261_vm0, %v4260_v1  ;;  %3767 = vmatprep.mubr.msk.bf16.mxu1 %vm4261_vm0, %v4260_v1  ;;  %p4198_p12 = pnand %p4197_p11, %p4396_p5 }
  0x26   : > { %p4205_p2 = por %p4204_p1, %p4203_p0 }
  0x27   : > { %3758 = vmatpush3.bf16.msra.mxu0 %v4122_v9  ;;  %3766 = vmatpush3.bf16.msra.mxu1 %v4123_v10  ;;  %p4199_p13 = pneg %p4198_p12 }
  0x28   : > { %3771 = vmatprep.subr.bf16.mxu0 %v4260_v1  ;;  %3779 = vmatprep.subr.bf16.mxu1 %v4260_v1 }
  0x29   : > { %p4206_p3 = pnand %p4205_p2, %p4199_p13 }
  0x2a   : > { %3760 = vmatmul.mubr.msk.bf16.vlgmr.msra.gmra.mrb[4].mxu0 %vm694_vm1, %v656_v8  ;;  %3768 = vmatmul.mubr.msk.bf16.vlgmr.msra.gmra.mrb[4].mxu1 %vm694_vm1, %v656_v8 }
  0x2b   : > { %3772 = vmatpush3.bf16.msra.mxu0 %v4124_v11  ;;  %3780 = vmatpush3.bf16.msra.mxu1 %v4125_v12 }
  0x2c   : > { %3773 = vmatprep.subr.bf16.mxu0 %v4260_v1  ;;  %3781 = vmatprep.subr.bf16.mxu1 %v4260_v1 }
  0x2d   : > { %3775 = vmatprep.mubr.msk.bf16.mxu0 %vm4261_vm0, %v4260_v1  ;;  %3783 = vmatprep.mubr.msk.bf16.mxu1 %vm4261_vm0, %v4260_v1 }
  0x2f   : > { %3774 = vmatpush3.bf16.msra.mxu0 %v4126_v14  ;;  %3782 = vmatpush3.bf16.msra.mxu1 %v4127_v15 }
  0x30   : > { %3787 = vmatprep.subr.bf16.mxu0 %v4260_v1  ;;  %3795 = vmatprep.subr.bf16.mxu1 %v4260_v1 }
  0x32   : > { %3776 = vmatmul.mubr.msk.bf16.vlgmr.msra.gmra.mrb[8].mxu0 %vm694_vm1, %v4484_v18  ;;  %3784 = vmatmul.mubr.msk.bf16.vlgmr.msra.gmra.mrb[8].mxu1 %vm694_vm1, %v4484_v18 }
  0x33   : > { %3788 = vmatpush3.bf16.msra.mxu0 %v4128_v16  ;;  %3796 = vmatpush3.bf16.msra.mxu1 %v4129_v17 }
  0x34   : > { %3789 = vmatprep.subr.bf16.mxu0 %v4260_v1  ;;  %3797 = vmatprep.subr.bf16.mxu1 %v4260_v1 }
  0x35   : > { %3791 = vmatprep.mubr.msk.bf16.mxu0 %vm4261_vm0, %v4260_v1  ;;  %3799 = vmatprep.mubr.msk.bf16.mxu1 %vm4261_vm0, %v4260_v1 }
  0x37   : > { %3790 = vmatpush3.bf16.msra.mxu0 %v4130_v19  ;;  %3798 = vmatpush3.bf16.msra.mxu1 %v4131_v20  ;;  %v3495_v19 = vld [vmem:[%s5004_s3 + $0x2] ss:$0 sm:$0xff]  ;;  %v3496_v20 = vld [vmem:[%s5004_s3 + $0x3] ss:$0 sm:$0xff] }
  0x38   : > { %3803 = vmatprep.subr.bf16.mxu0 %v4260_v1  ;;  %3811 = vmatprep.subr.bf16.mxu1 %v4260_v1 }
  0x3a   : > { %3792 = vmatmul.mubr.msk.bf16.vlgmr.msra.gmra.mrb[12].mxu0 %vm694_vm1, %v4484_v18  ;;  %3800 = vmatmul.mubr.msk.bf16.vlgmr.msra.gmra.mrb[12].mxu1 %vm694_vm1, %v4484_v18 }
  0x3b   : > { %3804 = vmatpush3.bf16.msra.mxu0 %v4132_v21  ;;  %3807 = vmatprep.mubr.msk.bf16.mxu0 %vm4261_vm0, %v4260_v1 }
  0x3c   : > { %3805 = vmatprep.subr.bf16.mxu0 %v4260_v1  ;;  %3815 = vmatprep.mubr.msk.bf16.mxu1 %vm4261_vm0, %v4260_v1 }
  0x3d   : > { %3812 = vmatpush3.bf16.msra.mxu1 %v4133_v22 }
  0x3e   : > { %3813 = vmatprep.subr.bf16.mxu1 %v4260_v1 }
  0x3f   : > { %3806 = vmatpush3.bf16.msra.mxu0 %v4134_v23 }
  0x40   : > { %3819 = vmatprep.subr.bf16.mxu0 %v4260_v1 }
  0x41   : > { %3814 = vmatpush3.bf16.msra.mxu1 %v4135_v24 }
  0x42   : > { %3808 = vmatmul.mubr.msk.bf16.vlgmr.msra.gmra.mrb[16].mxu0 %vm694_vm1, %v4484_v18  ;;  %3827 = vmatprep.subr.bf16.mxu1 %v4260_v1 }
  0x43   : > { %3823 = vmatprep.mubr.msk.bf16.mxu0 %vm4261_vm0, %v4260_v1  ;;  %3820 = vmatpush3.bf16.msra.mxu0 %v4136_v25 }
  0x44   : > { %3816 = vmatmul.mubr.msk.bf16.vlgmr.msra.gmra.mrb[16].mxu1 %vm694_vm1, %v4484_v18  ;;  %3821 = vmatprep.subr.bf16.mxu0 %v4260_v1 }
  0x45   : > { %3828 = vmatpush3.bf16.msra.mxu1 %v4137_v26  ;;  %3831 = vmatprep.mubr.msk.bf16.mxu1 %vm4261_vm0, %v4260_v1 }
  0x46   : > { %3829 = vmatprep.subr.bf16.mxu1 %v4260_v1 }
  0x47   : > { %3822 = vmatpush3.bf16.msra.mxu0 %v4138_v27  ;;  %v3525_v27 = vld [vmem:[%s5008_s7] ss:$0 sm:$0xff] }
  0x48   : > { %3835 = vmatprep.subr.bf16.mxu0 %v4260_v1 }
  0x49   : > { %3830 = vmatpush3.bf16.msra.mxu1 %v4139_v28 }
  0x4a   : > { %3841 = vmatprep.subr.bf16.mxu1 %v4260_v1  ;;  %3824 = vmatmul.mubr.msk.bf16.vlgmr.msra.gmra.mrb[20].mxu0 %vm694_vm1, %v4484_v18 }
  0x4b   : > { %3837 = vmatprep.mubr.msk.bf16.mxu0 %vm4261_vm0, %v4260_v1 }
  0x4c   : > { %3832 = vmatmul.mubr.msk.bf16.vlgmr.msra.gmra.mrb[20].mxu1 %vm694_vm1, %v4484_v18 }
  0x4d   : > { %3843 = vmatprep.mubr.msk.bf16.mxu1 %vm4261_vm0, %v4260_v1 }
  0xf5   : > { %v732_v29 = vpop.f32.mrb[0].mxu0  ;;  %v784_v30 = vpop.f32.mrb[0].mxu1 }
  0xf6   : > { %v3745_v31 = vpop.f32.mrb[1].mxu0  ;;  %v3753_v32 = vpop.f32.mrb[1].mxu1  ;;  %v733_v2 = vadd.f32 %v3493_v59, %v732_v29  ;;  %v785_v3 = vadd.f32 %v3494_v60, %v784_v30  ;;  %v3526_v29 = vld [vmem:[%s5008_s7 + $0x1] ss:$0 sm:$0xff] }
  0xf7   : > { %v735_v33 = vpop.f32.mrb[2].mxu0  ;;  %v787_v34 = vpop.f32.mrb[2].mxu1 }
  0xf8   : > { %v3746_v35 = vpop.f32.mrb[3].mxu0  ;;  %v3754_v36 = vpop.f32.mrb[3].mxu1  ;;  %v1361_v12 = vpack.c.bf16 %v733_v2, %v733_v2  ;;  %v1362_v13 = vpack.c.bf16 %v785_v3, %v785_v3 }
  0xfd   : > { %v836_v37 = vpop.f32.mrb[4].mxu0  ;;  %v888_v38 = vpop.f32.mrb[4].mxu1 }
  0xfe   : > { %v3761_v39 = vpop.f32.mrb[5].mxu0  ;;  %v3769_v40 = vpop.f32.mrb[5].mxu1  ;;  %v837_v23 = vadd.f32 %v3495_v19, %v836_v37  ;;  %v889_v24 = vadd.f32 %v3496_v20, %v888_v38 }
  0xff   : > { %v839_v41 = vpop.f32.mrb[6].mxu0  ;;  %v891_v42 = vpop.f32.mrb[6].mxu1 }
 0x100   : > { %v3762_v43 = vpop.f32.mrb[7].mxu0  ;;  %v3770_v44 = vpop.f32.mrb[7].mxu1  ;;  %v1363_v25 = vpack.c.bf16 %v837_v23, %v837_v23  ;;  %v1364_v26 = vpack.c.bf16 %v889_v24, %v889_v24 }
 0x105   : > { %v967_v47 = vpop.f32.mrb[8].mxu0  ;;  %v1019_v48 = vpop.f32.mrb[8].mxu1 }
 0x106   : > { %v968_v49 = vadd.f32 %v3509_v45, %v967_v47  ;;  %v1020_v50 = vadd.f32 %v3510_v46, %v1019_v48  ;;  %v3777_v51 = vpop.f32.mrb[9].mxu0  ;;  %v3785_v52 = vpop.f32.mrb[9].mxu1 }
 0x107   : > { %v970_v53 = vpop.f32.mrb[10].mxu0  ;;  %v1022_v54 = vpop.f32.mrb[10].mxu1 }
 0x108   : > { %v1365_v55 = vpack.c.bf16 %v968_v49, %v968_v49  ;;  %v1366_v56 = vpack.c.bf16 %v1020_v50, %v1020_v50  ;;  %v3778_v57 = vpop.f32.mrb[11].mxu0  ;;  %v3786_v58 = vpop.f32.mrb[11].mxu1 }
 0x10a   : > { %v1374_v61 = vsel %vm1369_vm2, %v1365_v55, 0  ;;  %v1420_v62 = vsel %vm1369_vm2, %v1366_v56, 0 }
 0x10b   : > { %3836 = vmatpush3.bf16.xpose.msra.mxu0 %v1374_v61  ;;  %3842 = vmatpush3.bf16.xpose.msra.mxu1 %v1420_v62 }
 0x10c   : > { %3847 = vmatprep.subr.bf16.mxu0 %v4260_v1  ;;  %3853 = vmatprep.subr.bf16.mxu1 %v4260_v1 }
 0x10d   : > { %v1071_v4 = vpop.f32.mrb[12].mxu0  ;;  %v1123_v5 = vpop.f32.mrb[12].mxu1 }
 0x10e   : > { %v1072_v6 = vadd.f32 %v3511_v63, %v1071_v4  ;;  %v1124_v7 = vadd.f32 %v3512_v0, %v1123_v5  ;;  %v3793_v8 = vpop.f32.mrb[13].mxu0  ;;  %v3801_v9 = vpop.f32.mrb[13].mxu1 }
 0x10f   : > { %v1074_v10 = vpop.f32.mrb[14].mxu0  ;;  %v1126_v11 = vpop.f32.mrb[14].mxu1 }
 0x110   : > { %v1367_v14 = vpack.c.bf16 %v1072_v6, %v1072_v6  ;;  %v1368_v15 = vpack.c.bf16 %v1124_v7, %v1124_v7  ;;  %v3794_v16 = vpop.f32.mrb[15].mxu0  ;;  %v3802_v17 = vpop.f32.mrb[15].mxu1 }
 0x112   : > { %v1466_v21 = vsel %vm1369_vm2, %v1367_v14, 0  ;;  %v1512_v22 = vsel %vm1369_vm2, %v1368_v15, 0  ;;  %3838 = vmatmul.mubr.msk.bf16.vlgmr.msra.gmra.mrb[24].mxu0 %vm1369_vm2, %v1361_v12  ;;  %3844 = vmatmul.mubr.msk.bf16.vlgmr.msra.gmra.mrb[24].mxu1 %vm1369_vm2, %v1362_v13 }
 0x113   : > { %3848 = vmatpush3.bf16.xpose.msra.mxu0 %v1466_v21  ;;  %3854 = vmatpush3.bf16.xpose.msra.mxu1 %v1512_v22 }
 0x114   : > { %3849 = vmatprep.mubr.msk.bf16.mxu0 %vm4261_vm0, %v4260_v1  ;;  %3855 = vmatprep.mubr.msk.bf16.mxu1 %vm4261_vm0, %v4260_v1 }
 0x115   : > { %3859 = vmatprep.subr.bf16.mxu0 %v4260_v1  ;;  %3865 = vmatprep.subr.bf16.mxu1 %v4260_v1  ;;  %v1199_v28 = vpop.f32.mrb[16].mxu0 }
 0x116   : > { %v1200_v30 = vadd.f32 %v3525_v27, %v1199_v28  ;;  %v3809_v31 = vpop.f32.mrb[17].mxu0 }
 0x117   : > { %v1202_v32 = vpop.f32.mrb[18].mxu0  ;;  %v1251_v33 = vpop.f32.mrb[16].mxu1 }
 0x118   : > { %v1607_v34 = vpack.c.bf16 %v1200_v30, %v1200_v30  ;;  %v3810_v35 = vpop.f32.mrb[19].mxu0  ;;  %v1252_v36 = vadd.f32 %v3526_v29, %v1251_v33  ;;  %v3817_v37 = vpop.f32.mrb[17].mxu1 }
 0x119   : > { %v1254_v38 = vpop.f32.mrb[18].mxu1  ;;  %v3527_v35 = vld [vmem:[%s5008_s7 + $0x2] ss:$0 sm:$0xff] }
 0x11a   : > { %3850 = vmatmul.mubr.msk.bf16.vlgmr.msra.gmra.mrb[28].mxu0 %vm1369_vm2, %v1363_v25  ;;  %3856 = vmatmul.mubr.msk.bf16.vlgmr.msra.gmra.mrb[28].mxu1 %vm1369_vm2, %v1364_v26  ;;  %v1616_v39 = vsel %vm1614_vm3, %v1607_v34, 0  ;;  %v1608_v40 = vpack.c.bf16 %v1252_v36, %v1252_v36  ;;  %v3818_v41 = vpop.f32.mrb[19].mxu1  ;;  %v3528_v38 = vld [vmem:[%s5008_s7 + $0x3] ss:$0 sm:$0xff] }
 0x11b   : > { %3861 = vmatprep.mubr.msk.bf16.mxu0 %vm4261_vm0, %v4260_v1  ;;  %3867 = vmatprep.mubr.msk.bf16.mxu1 %vm4261_vm0, %v4260_v1 }
 0x11c   : > { %3860 = vmatpush3.bf16.msra.mxu0 %v1616_v39  ;;  %v1662_v42 = vsel %vm1614_vm3, %v1608_v40, 0 }
 0x11d   : > { %3871 = vmatprep.subr.bf16.mxu0 %v4260_v1  ;;  %3866 = vmatpush3.bf16.msra.mxu1 %v1662_v42  ;;  %v4616_v43 = vpop.f32.mrb[20].mxu0 }
 0x11e   : > { %3877 = vmatprep.subr.bf16.mxu1 %v4260_v1  ;;  %v3825_v45 = vpop.f32.mrb[21].mxu0  ;;  %v1304_v36 = vadd.f32 %v3527_v35, %v4616_v43 }
 0x11f   : > { %v4618_v44 = vpop.f32.mrb[20].mxu1  ;;  %v1306_v47 = vpop.f32.mrb[22].mxu0 }
 0x120   : > { %v3833_v46 = vpop.f32.mrb[21].mxu1  ;;  %v3826_v49 = vpop.f32.mrb[23].mxu0  ;;  %v1609_v40 = vpack.c.bf16 %v1304_v36, %v1304_v36  ;;  %v1356_v41 = vadd.f32 %v3528_v38, %v4618_v44  ;;  %v651_v44 = vld [vmem:[%s5009_s8] sm:$0xf] }
 0x121   : > { %v1358_v48 = vpop.f32.mrb[22].mxu1 }
 0x122   : > { %v3834_v50 = vpop.f32.mrb[23].mxu1  ;;  %v1708_v48 = vsel %vm1614_vm3, %v1609_v40, 0  ;;  %v1610_v49 = vpack.c.bf16 %v1356_v41, %v1356_v41 }
 0x1e5   : > { %v1410_v51 = vpop.f32.mrb[24].mxu0  ;;  %v1456_v52 = vpop.f32.mrb[24].mxu1 }
 0x1e6   : > { %v1554_v53 = vmul.f32 0.35355338, %v1410_v51  ;;  %v3839_v54 = vpop.f32.mrb[25].mxu0  ;;  %v3845_v55 = vpop.f32.mrb[25].mxu1  ;;  %v1555_v58 = vmul.f32 0.35355338, %v1456_v52 }
 0x1e7   : > { %v1413_v56 = vpop.f32.mrb[26].mxu0  ;;  %v1459_v57 = vpop.f32.mrb[26].mxu1  ;;  %v1754_v52 = vsel %vm1614_vm3, %v1610_v49, 0  ;;  %v1804_v55 = vsel %vm1614_vm3, %v651_v44, 0 }
 0x1e8   : > { %v3840_v59 = vpop.f32.mrb[27].mxu0  ;;  %v3846_v60 = vpop.f32.mrb[27].mxu1  ;;  %v1559_v61 = vsel %vm1558_vm4, %v1554_v53, -inf  ;;  %v1562_v62 = vsel %vm1558_vm4, %v1555_v58, -inf }
 0x1e9   : > { %1560 = vmax.xlane.f32.xlu0 %v1559_v61  ;;  %v652_v59 = vld [vmem:[%s5009_s8 + $0x4] sm:$0xf]  ;;  %v653_v61 = vld [vmem:[%s5009_s8 + $0x8] sm:$0xf] }
 0x1ea   : > { %v1850_v60 = vsel %vm1614_vm3, %v652_v59, 0 }
 0x1ed   : > { %v1548_v63 = vpop.f32.mrb[28].mxu1  ;;  %1563 = vmax.xlane.f32.xlu0 %v1562_v62  ;;  %v1502_v0 = vpop.f32.mrb[28].mxu0 }
 0x1ee   : > { %v1556_v2 = vmul.f32 0.35355338, %v1502_v0  ;;  %v3851_v3 = vpop.f32.mrb[29].mxu0  ;;  %v3857_v4 = vpop.f32.mrb[29].mxu1  ;;  %v1557_v7 = vmul.f32 0.35355338, %v1548_v63 }
 0x1ef   : > { %v1505_v5 = vpop.f32.mrb[30].mxu0  ;;  %v1551_v6 = vpop.f32.mrb[30].mxu1  ;;  %v654_v4 = vld [vmem:[%s5009_s8 + $0xc] sm:$0xf] }
 0x1f0   : > { %v3852_v8 = vpop.f32.mrb[31].mxu0  ;;  %v3858_v9 = vpop.f32.mrb[31].mxu1  ;;  %v1565_v10 = vsel %vm1558_vm4, %v1556_v2, -inf  ;;  %v1568_v11 = vsel %vm1558_vm4, %v1557_v7, -inf }
 0x1f1   : > { %1566 = vmax.xlane.f32.xlu1 %v1565_v10  ;;  %v1942_v9 = vsel %vm1614_vm3, %v654_v4, 0  ;;  %v4155_v4 = vld [vmem:[%s5013_s12 + $0x38] sm:$0xff]  }
 0x1f5   : > { %1569 = vmax.xlane.f32.xlu1 %v1568_v11 }
 0x276   : > { %v1561_v12 = vpop.xlane.xlu0 %1560 }
 0x277   : > { %v1571_v13 = vsub.f32 %v1554_v53, %v1561_v12 }
 0x279   : > { %v1575_v14 = vmul.f32 1.442695, %v1571_v13  ;;  %v4140_v13 = vld [vmem:[%s5011_s10] sm:$0xff]  }
 0x27a   : > { %v1564_v15 = vpop.xlane.xlu0 %1563 }
 0x27b   : > { %4164 = vpow2.f32 %v1575_v14  ;;  %v1572_v16 = vsub.f32 %v1555_v58, %v1564_v15 }
 0x27d   : > { %v1577_v17 = vmul.f32 1.442695, %v1572_v16 }
 0x27e   : > { %v1567_v19 = vpop.xlane.xlu1 %1566 }
 0x27f   : > { %4166 = vpow2.f32 %v1577_v17  ;;  %v1573_v20 = vsub.f32 %v1556_v2, %v1567_v19  ;;  %v1896_v2 = vsel %vm1614_vm3, %v653_v61, 0  ;;  %v4153_v61 = vld [vmem:[%s5013_s12 + $0x30] sm:$0xff]  }
 0x281   : > { %v1579_v21 = vmul.f32 1.442695, %v1573_v20  ;;  %v4141_v20 = vld [vmem:[%s5011_s10 + $0x10] sm:$0xff]  }
 0x282   : > { %v1570_v22 = vpop.xlane.xlu1 %1569 }
 0x283   : > { %4168 = vpow2.f32 %v1579_v21  ;;  %v1574_v23 = vsub.f32 %v1557_v7, %v1570_v22  ;;  %v4142_v21 = vld [vmem:[%s5011_s10 + $0x8] sm:$0xff]  }
 0x285   : > { %v4165_v24 = vpop.eup %4164  ;;  %v1581_v25 = vmul.f32 1.442695, %v1574_v23 }
 0x286   : > { %v1583_v26 = vsel %vm1558_vm4, %v4165_v24, 0.0 }
 0x287   : > { %4170 = vpow2.f32 %v1581_v25  ;;  %1584 = vadd.xlane.f32.xlu0 %v1583_v26  ;;  %v4143_v26 = vld [vmem:[%s5011_s10 + $0x18] sm:$0xff]  }
 0x289   : > { %v4167_v27 = vpop.eup %4166 }
 0x28a   : > { %v1586_v28 = vsel %vm1558_vm4, %v4167_v27, 0.0 }
 0x28b   : > { %1587 = vadd.xlane.f32.xlu1 %v1586_v28  ;;  %v4145_v28 = vld [vmem:[%s5011_s10 + $0x30] sm:$0xff]  }
 0x28d   : > { %v4169_v29 = vpop.eup %4168 }
 0x28e   : > { %v1589_v30 = vsel %vm1558_vm4, %v4169_v29, 0.0 }
 0x28f   : > { %1590 = vadd.xlane.f32.xlu0 %v1589_v30  ;;  %v4147_v30 = vld [vmem:[%s5011_s10 + $0x38] sm:$0xff]  }
 0x291   : > { %v4171_v31 = vpop.eup %4170 }
 0x292   : > { %v1592_v32 = vsel %vm1558_vm4, %v4171_v31, 0.0 }
 0x293   : > { %1593 = vadd.xlane.f32.xlu1 %v1592_v32  ;;  %v4149_v32 = vld [vmem:[%s5013_s12 + $0x10] sm:$0xff]  }
 0x314   : > { %v1585_v33 = vpop.xlane.xlu0 %1584 }
 0x315   : > { %4172 = vrcp.f32 %v1585_v33  ;;  %v4151_v33 = vld [vmem:[%s5013_s12 + $0x18] sm:$0xff]  }
 0x318   : > { %v1588_v34 = vpop.xlane.xlu1 %1587 }
 0x319   : > { %4174 = vrcp.f32 %v1588_v34 }
 0x31c   : > { %v1591_v37 = vpop.xlane.xlu0 %1590 }
 0x31d   : > { %4176 = vrcp.f32 %v1591_v37 }
 0x31f   : > { %v4173_v39 = vpop.eup %4172 }
 0x320   : > { %v1599_v42 = vmul.f32 %v4173_v39, %v4165_v24  ;;  %v1594_v45 = vpop.xlane.xlu1 %1593 }
 0x321   : > { %4178 = vrcp.f32 %v1594_v45 }
 0x322   : > { %v1603_v46 = vpack.c.bf16 %v1599_v42, %v1599_v42 }
 0x323   : > { %v4175_v47 = vpop.eup %4174 }
 0x324   : > { %v1600_v50 = vmul.f32 %v4175_v47, %v4167_v27  ;;  %3862 = vmatmul.mubr.msk.bf16.vlgmr.msra.gmra.mrb[32].mxu0 %vm1369_vm2, %v1603_v46  ;;  %v4144_v27 = vld [vmem:[%s5011_s10 + $0x20] sm:$0xff]  }
 0x325   : > { %3872 = vmatpush3.bf16.msra.mxu0 %v1708_v48  ;;  %3873 = vmatprep.mubr.msk.bf16.mxu0 %vm4261_vm0, %v4260_v1 }
 0x326   : > { %v1604_v43 = vpack.c.bf16 %v1600_v50, %v1600_v50  ;;  %3883 = vmatprep.subr.bf16.mxu0 %v4260_v1 }
 0x327   : > { %v4177_v51 = vpop.eup %4176 }
 0x328   : > { %v1601_v53 = vmul.f32 %v4177_v51, %v4169_v29  ;;  %3868 = vmatmul.mubr.msk.bf16.vlgmr.msra.gmra.mrb[32].mxu1 %vm1369_vm2, %v1604_v43  ;;  %v4146_v29 = vld [vmem:[%s5011_s10 + $0x28] sm:$0xff]  }
 0x329   : > { %3878 = vmatpush3.bf16.msra.mxu1 %v1754_v52  ;;  %3879 = vmatprep.mubr.msk.bf16.mxu1 %vm4261_vm0, %v4260_v1  ;;  %v3553_v52 = vld [vmem:[%s5010_s9] ss:$0 sm:$0xff] }
 0x32a   : > { %v1605_v54 = vpack.c.bf16 %v1601_v53, %v1601_v53  ;;  %3889 = vmatprep.subr.bf16.mxu1 %v4260_v1 }
 0x32b   : > { %v4179_v56 = vpop.eup %4178 }
 0x32c   : > { %v1602_v57 = vmul.f32 %v4179_v56, %v4171_v31  ;;  %3874 = vmatmul.mubr.msk.bf16.vlgmr.msra.gmra.mrb[36].mxu0 %vm1369_vm2, %v1605_v54  ;;  %v4148_v31 = vld [vmem:[%s5013_s12] sm:$0xff]  }
 0x32d   : > { %3884 = vmatpush3.bf16.msra.mxu0 %v1804_v55  ;;  %3885 = vmatprep.mubr.msk.bf16.mxu0 %vm4261_vm0, %v4260_v1 }
 0x32e   : > { %v1606_v58 = vpack.c.bf16 %v1602_v57, %v1602_v57  ;;  %3895 = vmatprep.subr.bf16.mxu0 %v4260_v1 }
 0x330   : > { %3880 = vmatmul.mubr.msk.bf16.vlgmr.msra.gmra.mrb[36].mxu1 %vm1369_vm2, %v1606_v58 }
 0x331   : > { %3891 = vmatprep.mubr.msk.bf16.mxu1 %vm4261_vm0, %v4260_v1  ;;  %3890 = vmatpush3.bf16.msra.mxu1 %v1850_v60  ;;  %v4152_v60 = vld [vmem:[%s5013_s12 + $0x20] sm:$0xff]  }
 0x332   : > { %3901 = vmatprep.subr.bf16.mxu1 %v4260_v1 }
 0x3f7   : > { %v1652_v62 = vpop.f32.mrb[32].mxu0 }
 0x3f8   : > { %v1796_v63 = vpack.c.bf16 %v1652_v62, %v1652_v62  ;;  %v3863_v0 = vpop.f32.mrb[33].mxu0 }
 0x3f9   : > { %v1655_v3 = vpop.f32.mrb[34].mxu0 }
 0x3fa   : > { %v3864_v5 = vpop.f32.mrb[35].mxu0  ;;  %3886 = vmatmul.mubr.msk.bf16.vlgmr.msra.gmra.mrb[40].mxu0 %vm1369_vm2, %v1796_v63  ;;  %v4154_v3 = vld [vmem:[%s5013_s12 + $0x28] sm:$0xff]  }
 0x3fb   : > { %v1698_v6 = vpop.f32.mrb[32].mxu1  ;;  %3896 = vmatpush3.bf16.msra.mxu0 %v1896_v2  ;;  %3897 = vmatprep.mubr.msk.bf16.mxu0 %vm4261_vm0, %v4260_v1  ;;  %v4156_v5 = vld [vmem:[%s5015_s14] sm:$0xff]  }
 0x3fc   : > { %v1797_v7 = vpack.c.bf16 %v1698_v6, %v1698_v6  ;;  %v3869_v8 = vpop.f32.mrb[33].mxu1  ;;  %3907 = vmatprep.subr.bf16.mxu0 %v4260_v1  ;;  %v4157_v6 = vld [vmem:[%s5015_s14 + $0x10] sm:$0xff]  }
 0x3fd   : > { %v1701_v10 = vpop.f32.mrb[34].mxu1  ;;  %v4159_v8 = vld [vmem:[%s5015_s14 + $0x18] sm:$0xff]  }
 0x3fe   : > { %v3870_v11 = vpop.f32.mrb[35].mxu1  ;;  %3892 = vmatmul.mubr.msk.bf16.vlgmr.msra.gmra.mrb[40].mxu1 %vm1369_vm2, %v1797_v7  ;;  %v4158_v7 = vld [vmem:[%s5015_s14 + $0x8] sm:$0xff]   ;;  %v4161_v10 = vld [vmem:[%s5015_s14 + $0x30] sm:$0xff]  }
 0x3ff   : > { %v1744_v12 = vpop.f32.mrb[36].mxu0  ;;  %3902 = vmatpush3.bf16.msra.mxu1 %v1942_v9  ;;  %3903 = vmatprep.mubr.msk.bf16.mxu1 %vm4261_vm0, %v4260_v1  ;;  %v4160_v9 = vld [vmem:[%s5015_s14 + $0x20] sm:$0xff]   ;;  %v4162_v11 = vld [vmem:[%s5015_s14 + $0x28] sm:$0xff]  }
 0x400   : > { %v1798_v14 = vpack.c.bf16 %v1744_v12, %v1744_v12  ;;  %v3875_v15 = vpop.f32.mrb[37].mxu0  ;;  %3915 = vmatprep.subr.bf16.mxu1 %v4260_v1  ;;  %v4163_v12 = vld [vmem:[%s5015_s14 + $0x38] sm:$0xff]  }
 0x401   : > { %v1747_v16 = vpop.f32.mrb[38].mxu0 }
 0x402   : > { %v3876_v17 = vpop.f32.mrb[39].mxu0  ;;  %3898 = vmatmul.mubr.msk.bf16.vlgmr.msra.gmra.mrb[44].mxu0 %vm1369_vm2, %v1798_v14 }
 0x403   : > { %v1790_v19 = vpop.f32.mrb[36].mxu1  ;;  %3908 = vmatpush3.bf16.msra.mxu0 %v4140_v13  ;;  %3911 = vmatprep.mubr.msk.bf16.mxu0 %vm4261_vm0, %v4260_v1 }
 0x404   : > { %v1799_v22 = vpack.c.bf16 %v1790_v19, %v1790_v19  ;;  %v3881_v23 = vpop.f32.mrb[37].mxu1  ;;  %3909 = vmatprep.subr.bf16.mxu0 %v4260_v1 }
 0x405   : > { %v1793_v24 = vpop.f32.mrb[38].mxu1 }
 0x406   : > { %v3882_v25 = vpop.f32.mrb[39].mxu1  ;;  %3904 = vmatmul.mubr.msk.bf16.vlgmr.msra.gmra.mrb[44].mxu1 %vm1369_vm2, %v1799_v22 }
 0x407   : > { %3916 = vmatpush3.bf16.msra.mxu1 %v4141_v20  ;;  %3910 = vmatpush3.bf16.msra.mxu0 %v4142_v21 }
 0x408   : > { %3917 = vmatprep.subr.bf16.mxu1 %v4260_v1  ;;  %3923 = vmatprep.subr.bf16.mxu0 %v4260_v1 }
 0x409   : > { %3919 = vmatprep.mubr.msk.bf16.mxu1 %vm4261_vm0, %v4260_v1 }
 0x40a   : > { %3912 = vmatmul.mubr.msk.bf16.vlgmr.msra.gmra.mrb[48].mxu0 %vm694_vm1, %v4484_v18 }
 0x40b   : > { %3927 = vmatprep.mubr.msk.bf16.mxu0 %vm4261_vm0, %v4260_v1  ;;  %3918 = vmatpush3.bf16.msra.mxu1 %v4143_v26  ;;  %v3570_v26 = vld [vmem:[%s5014_s13] ss:$0 sm:$0xff] }
 0x40c   : > { %3931 = vmatprep.subr.bf16.mxu1 %v4260_v1  ;;  %3924 = vmatpush3.bf16.msra.mxu0 %v4144_v27  ;;  %v3571_v27 = vld [vmem:[%s5014_s13 + $0x1] ss:$0 sm:$0xff] }
 0x40d   : > { %3925 = vmatprep.subr.bf16.mxu0 %v4260_v1 }
 0x40e   : > { %3920 = vmatmul.mubr.msk.bf16.vlgmr.msra.gmra.mrb[48].mxu1 %vm694_vm1, %v4484_v18 }
 0x40f   : > { %3932 = vmatpush3.bf16.msra.mxu1 %v4145_v28  ;;  %3935 = vmatprep.mubr.msk.bf16.mxu1 %vm4261_vm0, %v4260_v1 }
 0x410   : > { %3933 = vmatprep.subr.bf16.mxu1 %v4260_v1  ;;  %3926 = vmatpush3.bf16.msra.mxu0 %v4146_v29 }
 0x411   : > { %3939 = vmatprep.subr.bf16.mxu0 %v4260_v1 }
 0x413   : > { %3934 = vmatpush3.bf16.msra.mxu1 %v4147_v30  ;;  %3928 = vmatmul.mubr.msk.bf16.vlgmr.msra.gmra.mrb[52].mxu0 %vm694_vm1, %v4484_v18 }
 0x414   : > { %3947 = vmatprep.subr.bf16.mxu1 %v4260_v1  ;;  %3943 = vmatprep.mubr.msk.bf16.mxu0 %vm4261_vm0, %v4260_v1 }
 0x415   : > { %3940 = vmatpush3.bf16.msra.mxu0 %v4148_v31 }
 0x416   : > { %3936 = vmatmul.mubr.msk.bf16.vlgmr.msra.gmra.mrb[52].mxu1 %vm694_vm1, %v4484_v18  ;;  %3941 = vmatprep.subr.bf16.mxu0 %v4260_v1  ;;  %v4150_v18 = vld [vmem:[%s5013_s12 + $0x8] sm:$0xff]  }
 0x417   : > { %3951 = vmatprep.mubr.msk.bf16.mxu1 %vm4261_vm0, %v4260_v1  ;;  %3948 = vmatpush3.bf16.msra.mxu1 %v4149_v32 }
 0x418   : > { %3949 = vmatprep.subr.bf16.mxu1 %v4260_v1 }
 0x419   : > { %3942 = vmatpush3.bf16.msra.mxu0 %v4150_v18 }
 0x41a   : > { %3955 = vmatprep.subr.bf16.mxu0 %v4260_v1 }
 0x41b   : > { %3950 = vmatpush3.bf16.msra.mxu1 %v4151_v33 }
 0x41c   : > { %3963 = vmatprep.subr.bf16.mxu1 %v4260_v1 }
 0x4cd   : > { %v1840_v34 = vpop.f32.mrb[40].mxu0 }
 0x4ce   : > { %v3887_v35 = vpop.f32.mrb[41].mxu0  ;;  %v1985_v39 = vsel %vm1984_vm5, %v1840_v34, 0.0 }
 0x4cf   : > { %v1843_v36 = vpop.f32.mrb[42].mxu0 }
 0x4d0   : > { %v3888_v37 = vpop.f32.mrb[43].mxu0 }
 0x4d1   : > { %v1886_v38 = vpop.f32.mrb[40].mxu1 }
 0x4d2   : > { %v1986_v40 = vsel %vm1984_vm5, %v1886_v38, 0.0  ;;  %v3893_v41 = vpop.f32.mrb[41].mxu1 }
 0x4d3   : > { %v1987_v42 = vadd.f32 %v1986_v40, %v1985_v39  ;;  %v1889_v45 = vpop.f32.mrb[42].mxu1  ;;  %v3554_v39 = vld [vmem:[%s5012_s11] ss:$0 sm:$0xff]  ;;  %v3555_v40 = vld [vmem:[%s5012_s11 + $0x1] ss:$0 sm:$0xff] }
 0x4d4   : > { %v3894_v46 = vpop.f32.mrb[43].mxu1  ;;  %v3572_v45 = vld [vmem:[%s5014_s13 + $0x2] ss:$0 sm:$0xff] }
 0x4d5   : > { %v1932_v47 = vpop.f32.mrb[44].mxu0  ;;  %v3573_v46 = vld [vmem:[%s5014_s13 + $0x3] ss:$0 sm:$0xff] }
 0x4d6   : > { %v1988_v48 = vsel %vm1984_vm5, %v1932_v47, 0.0  ;;  %v3899_v49 = vpop.f32.mrb[45].mxu0 }
 0x4d7   : > { %v1989_v50 = vadd.f32 %v1988_v48, %v1987_v42  ;;  %v1935_v43 = vpop.f32.mrb[46].mxu0 }
 0x4d8   : > { %v3900_v51 = vpop.f32.mrb[47].mxu0 }
 0x4d9   : > { %v1978_v44 = vpop.f32.mrb[44].mxu1 }
 0x4da   : > { %v1990_v53 = vsel %vm1984_vm5, %v1978_v44, 0.0  ;;  %v3905_v54 = vpop.f32.mrb[45].mxu1 }
 0x4db   : > { %v1991_v55 = vadd.f32 %v1990_v53, %v1989_v50  ;;  %v1981_v56 = vpop.f32.mrb[46].mxu1 }
 0x4dc   : > { %v3906_v57 = vpop.f32.mrb[47].mxu1 }
 0x4dd   : > { %v1998_v58 = vadd.f32 %v3553_v52, %v1991_v55  ;;  %v4755_v59 = vpop.f32.mrb[48].mxu0 }
 0x4de   : > { %v3913_v62 = vpop.f32.mrb[49].mxu0  ;;  %v2136_v47 = vadd.f32 %v3554_v39, %v4755_v59  ;;  %v3556_v59 = vld [vmem:[%s5012_s11 + $0x2] ss:$0 sm:$0xff] }
 0x4df   : > { %v2064_v63 = vpack.c.bf16 %v1998_v58, %v1998_v58  ;;  %v2138_v0 = vpop.f32.mrb[50].mxu0  ;;  %v3557_v62 = vld [vmem:[%s5012_s11 + $0x3] ss:$0 sm:$0xff] }
 0x4e0   : > { %v3914_v2 = vpop.f32.mrb[51].mxu0  ;;  %v2764_v55 = vpack.c.bf16 %v2136_v47, %v2136_v47 }
 0x4e1   : > { %3944 = vmatmul.mubr.msk.bf16.vlgmr.msra.gmra.mrb[56].mxu0 %vm694_vm1, %v2064_v63  ;;  %3952 = vmatmul.mubr.msk.bf16.vlgmr.msra.gmra.mrb[56].mxu1 %vm694_vm1, %v2064_v63  ;;  %v2187_v13 = vpop.f32.mrb[48].mxu1  ;;  %v3586_v2 = vld [vmem:[%s5016_s15] ss:$0 sm:$0xff] }
 0x4e2   : > { %3956 = vmatpush3.bf16.msra.mxu0 %v4152_v60  ;;  %3964 = vmatpush3.bf16.msra.mxu1 %v4153_v61  ;;  %v3921_v14 = vpop.f32.mrb[49].mxu1  ;;  %v2188_v48 = vadd.f32 %v3555_v40, %v2187_v13 }
 0x4e3   : > { %3957 = vmatprep.subr.bf16.mxu0 %v4260_v1  ;;  %3965 = vmatprep.subr.bf16.mxu1 %v4260_v1  ;;  %v2190_v15 = vpop.f32.mrb[50].mxu1 }
 0x4e4   : > { %3959 = vmatprep.mubr.msk.bf16.mxu0 %vm4261_vm0, %v4260_v1  ;;  %3967 = vmatprep.mubr.msk.bf16.mxu1 %vm4261_vm0, %v4260_v1  ;;  %v3922_v16 = vpop.f32.mrb[51].mxu1  ;;  %v2765_v56 = vpack.c.bf16 %v2188_v48, %v2188_v48 }
 0x4e6   : > { %3958 = vmatpush3.bf16.msra.mxu0 %v4154_v3  ;;  %3966 = vmatpush3.bf16.msra.mxu1 %v4155_v4  ;;  %v2239_v17 = vpop.f32.mrb[52].mxu0  ;;  %v3587_v3 = vld [vmem:[%s5016_s15 + $0x1] ss:$0 sm:$0xff] }
 0x4e7   : > { %3971 = vmatprep.subr.bf16.mxu0 %v4260_v1  ;;  %3979 = vmatprep.subr.bf16.mxu1 %v4260_v1  ;;  %v3929_v19 = vpop.f32.mrb[53].mxu0  ;;  %v2240_v4 = vadd.f32 %v3556_v59, %v2239_v17 }
 0x4e8   : > { %v2242_v20 = vpop.f32.mrb[54].mxu0 }
 0x4e9   : > { %3960 = vmatmul.mubr.msk.bf16.vlgmr.msra.gmra.mrb[60].mxu0 %vm694_vm1, %v2064_v63  ;;  %3968 = vmatmul.mubr.msk.bf16.vlgmr.msra.gmra.mrb[60].mxu1 %vm694_vm1, %v2064_v63  ;;  %v2291_v21 = vpop.f32.mrb[52].mxu1  ;;  %v3930_v22 = vpop.f32.mrb[55].mxu0  ;;  %v2766_v14 = vpack.c.bf16 %v2240_v4, %v2240_v4 }
 0x4ea   : > { %3972 = vmatpush3.bf16.msra.mxu0 %v4156_v5  ;;  %3980 = vmatpush3.bf16.msra.mxu1 %v4157_v6  ;;  %v3937_v23 = vpop.f32.mrb[53].mxu1  ;;  %v2292_v5 = vadd.f32 %v3557_v62, %v2291_v21 }
 0x4eb   : > { %3973 = vmatprep.subr.bf16.mxu0 %v4260_v1  ;;  %3981 = vmatprep.subr.bf16.mxu1 %v4260_v1  ;;  %v2294_v24 = vpop.f32.mrb[54].mxu1  ;;  %v3588_v23 = vld [vmem:[%s5016_s15 + $0x2] ss:$0 sm:$0xff] }
 0x4ec   : > { %3975 = vmatprep.mubr.msk.bf16.mxu0 %vm4261_vm0, %v4260_v1  ;;  %3983 = vmatprep.mubr.msk.bf16.mxu1 %vm4261_vm0, %v4260_v1  ;;  %v3938_v25 = vpop.f32.mrb[55].mxu1  ;;  %v2767_v15 = vpack.c.bf16 %v2292_v5, %v2292_v5  ;;  %v3589_v24 = vld [vmem:[%s5016_s15 + $0x3] ss:$0 sm:$0xff] }
 0x4ee   : > { %3974 = vmatpush3.bf16.msra.mxu0 %v4158_v7  ;;  %3982 = vmatpush3.bf16.msra.mxu1 %v4159_v8 }
 0x4ef   : > { %3987 = vmatprep.subr.bf16.mxu0 %v4260_v1  ;;  %3995 = vmatprep.subr.bf16.mxu1 %v4260_v1 }
 0x4f1   : > { %3976 = vmatmul.mubr.msk.bf16.vlgmr.msra.gmra.mrb[64].mxu0 %vm694_vm1, %v2064_v63  ;;  %3984 = vmatmul.mubr.msk.bf16.vlgmr.msra.gmra.mrb[64].mxu1 %vm694_vm1, %v2064_v63 }
 0x4f2   : > { %3988 = vmatpush3.bf16.msra.mxu0 %v4160_v9  ;;  %3996 = vmatpush3.bf16.msra.mxu1 %v4161_v10 }
 0x4f3   : > { %3989 = vmatprep.subr.bf16.mxu0 %v4260_v1  ;;  %3997 = vmatprep.subr.bf16.mxu1 %v4260_v1 }
 0x4f4   : > { %3991 = vmatprep.mubr.msk.bf16.mxu0 %vm4261_vm0, %v4260_v1  ;;  %3999 = vmatprep.mubr.msk.bf16.mxu1 %vm4261_vm0, %v4260_v1 }
 0x4f6   : > { %3990 = vmatpush3.bf16.msra.mxu0 %v4162_v11  ;;  %3998 = vmatpush3.bf16.msra.mxu1 %v4163_v12 }
 0x4f7   : > { %4003 = vmatprep.subr.bf16.mxu0 %v4260_v1  ;;  %4009 = vmatprep.subr.bf16.mxu1 %v4260_v1 }
 0x4f9   : > { %3992 = vmatmul.mubr.msk.bf16.vlgmr.msra.gmra.mrb[68].mxu0 %vm694_vm1, %v2064_v63  ;;  %4000 = vmatmul.mubr.msk.bf16.vlgmr.msra.gmra.mrb[68].mxu1 %vm694_vm1, %v2064_v63 }
 0x4fa   : > { %4005 = vmatprep.mubr.msk.bf16.mxu0 %vm4261_vm0, %v4260_v1  ;;  %4011 = vmatprep.mubr.msk.bf16.mxu1 %vm4261_vm0, %v4260_v1 }
 0x5b4   : > { %v2370_v28 = vpop.f32.mrb[56].mxu0  ;;  %v2422_v29 = vpop.f32.mrb[56].mxu1 }
 0x5b5   : > { %v2371_v30 = vadd.f32 %v3570_v26, %v2370_v28  ;;  %v2423_v31 = vadd.f32 %v3571_v27, %v2422_v29  ;;  %v3945_v32 = vpop.f32.mrb[57].mxu0  ;;  %v3953_v18 = vpop.f32.mrb[57].mxu1 }
 0x5b6   : > { %v2373_v33 = vpop.f32.mrb[58].mxu0  ;;  %v2425_v34 = vpop.f32.mrb[58].mxu1 }
 0x5b7   : > { %v2768_v35 = vpack.c.bf16 %v2371_v30, %v2371_v30  ;;  %v2769_v36 = vpack.c.bf16 %v2423_v31, %v2423_v31  ;;  %v3946_v37 = vpop.f32.mrb[59].mxu0  ;;  %v3954_v38 = vpop.f32.mrb[59].mxu1 }
 0x5b9   : > { %v2776_v41 = vsel %vm1369_vm2, %v2768_v35, 0  ;;  %v2822_v42 = vsel %vm1369_vm2, %v2769_v36, 0 }
 0x5ba   : > { %4004 = vmatpush3.bf16.xpose.msra.mxu0 %v2776_v41  ;;  %4010 = vmatpush3.bf16.xpose.msra.mxu1 %v2822_v42 }
 0x5bb   : > { %4015 = vmatprep.subr.bf16.mxu0 %v4260_v1  ;;  %4021 = vmatprep.subr.bf16.mxu1 %v4260_v1 }
 0x5bc   : > { %v2474_v49 = vpop.f32.mrb[60].mxu0  ;;  %v2526_v50 = vpop.f32.mrb[60].mxu1 }
 0x5bd   : > { %v2475_v43 = vadd.f32 %v3572_v45, %v2474_v49  ;;  %v2527_v51 = vadd.f32 %v3573_v46, %v2526_v50  ;;  %v3961_v44 = vpop.f32.mrb[61].mxu0  ;;  %v3969_v52 = vpop.f32.mrb[61].mxu1 }
 0x5be   : > { %v2477_v53 = vpop.f32.mrb[62].mxu0  ;;  %v2529_v54 = vpop.f32.mrb[62].mxu1 }
 0x5bf   : > { %v2770_v57 = vpack.c.bf16 %v2475_v43, %v2475_v43  ;;  %v2771_v58 = vpack.c.bf16 %v2527_v51, %v2527_v51  ;;  %v3962_v60 = vpop.f32.mrb[63].mxu0  ;;  %v3970_v61 = vpop.f32.mrb[63].mxu1 }
 0x5c1   : > { %v2868_v63 = vsel %vm1369_vm2, %v2770_v57, 0  ;;  %v2914_v0 = vsel %vm1369_vm2, %v2771_v58, 0  ;;  %4006 = vmatmul.mubr.msk.bf16.vlgmr.msra.gmra.mrb[72].mxu0 %vm1369_vm2, %v2764_v55  ;;  %4012 = vmatmul.mubr.msk.bf16.vlgmr.msra.gmra.mrb[72].mxu1 %vm1369_vm2, %v2765_v56 }
 0x5c2   : > { %4016 = vmatpush3.bf16.xpose.msra.mxu0 %v2868_v63  ;;  %4022 = vmatpush3.bf16.xpose.msra.mxu1 %v2914_v0 }
 0x5c3   : > { %4017 = vmatprep.mubr.msk.bf16.mxu0 %vm4261_vm0, %v4260_v1  ;;  %4023 = vmatprep.mubr.msk.bf16.mxu1 %vm4261_vm0, %v4260_v1 }
 0x5c4   : > { %v2602_v6 = vpop.f32.mrb[64].mxu0  ;;  %v2654_v7 = vpop.f32.mrb[64].mxu1  ;;  %4027 = vmatprep.subr.bf16.mxu0 %v4260_v1  ;;  %4033 = vmatprep.subr.bf16.mxu1 %v4260_v1 }
 0x5c5   : > { %v2603_v8 = vadd.f32 %v3586_v2, %v2602_v6  ;;  %v2655_v9 = vadd.f32 %v3587_v3, %v2654_v7  ;;  %v3977_v10 = vpop.f32.mrb[65].mxu0  ;;  %v3985_v11 = vpop.f32.mrb[65].mxu1 }
 0x5c6   : > { %v2605_v12 = vpop.f32.mrb[66].mxu0  ;;  %v2657_v13 = vpop.f32.mrb[66].mxu1 }
 0x5c7   : > { %v3009_v16 = vpack.c.bf16 %v2603_v8, %v2603_v8  ;;  %v3010_v17 = vpack.c.bf16 %v2655_v9, %v2655_v9  ;;  %v3978_v19 = vpop.f32.mrb[67].mxu0  ;;  %v3986_v20 = vpop.f32.mrb[67].mxu1 }
 0x5c9   : > { %v3018_v21 = vsel %vm3016_vm6, %v3009_v16, 0  ;;  %v3064_v22 = vsel %vm3016_vm6, %v3010_v17, 0  ;;  %4018 = vmatmul.mubr.msk.bf16.vlgmr.msra.gmra.mrb[76].mxu0 %vm1369_vm2, %v2766_v14  ;;  %4024 = vmatmul.mubr.msk.bf16.vlgmr.msra.gmra.mrb[76].mxu1 %vm1369_vm2, %v2767_v15 }
 0x5ca   : > { %4028 = vmatpush3.bf16.msra.mxu0 %v3018_v21  ;;  %4034 = vmatpush3.bf16.msra.mxu1 %v3064_v22 }
 0x5cb   : > { %4029 = vmatprep.mubr.msk.bf16.mxu0 %vm4261_vm0, %v4260_v1  ;;  %4035 = vmatprep.mubr.msk.bf16.mxu1 %vm4261_vm0, %v4260_v1 }
 0x5cc   : > { %v2706_v25 = vpop.f32.mrb[68].mxu0  ;;  %v2758_v26 = vpop.f32.mrb[68].mxu1  ;;  %4039 = vmatprep.subr.bf16.mxu0 %v4260_v1  ;;  %4045 = vmatprep.subr.bf16.mxu1 %v4260_v1 }
 0x5cd   : > { %v2707_v27 = vadd.f32 %v3588_v23, %v2706_v25  ;;  %v2759_v28 = vadd.f32 %v3589_v24, %v2758_v26  ;;  %v3993_v29 = vpop.f32.mrb[69].mxu0  ;;  %v4001_v30 = vpop.f32.mrb[69].mxu1 }
 0x5ce   : > { %v2709_v31 = vpop.f32.mrb[70].mxu0  ;;  %v2761_v32 = vpop.f32.mrb[70].mxu1 }
 0x5cf   : > { %v3011_v18 = vpack.c.bf16 %v2707_v27, %v2707_v27  ;;  %v3012_v33 = vpack.c.bf16 %v2759_v28, %v2759_v28  ;;  %v3994_v34 = vpop.f32.mrb[71].mxu0  ;;  %v4002_v35 = vpop.f32.mrb[71].mxu1  ;;  %v2060_v31 = vld [vmem:[%s5017_s16 + $0x4] sm:$0xf] }
 0x5d1   : > { %v4891_v36 = vsel %vm3016_vm6, %v3011_v18, 0  ;;  %v4894_v37 = vsel %vm3016_vm6, %v3012_v33, 0  ;;  %v2059_v33 = vld [vmem:[%s5017_s16] sm:$0xf] }
 0x694   : > { %v2812_v38 = vpop.f32.mrb[72].mxu0  ;;  %v2858_v39 = vpop.f32.mrb[72].mxu1 }
 0x695   : > { %v2956_v40 = vmul.f32 0.35355338, %v2812_v38  ;;  %v2957_v41 = vmul.f32 0.35355338, %v2858_v39  ;;  %v4007_v42 = vpop.f32.mrb[73].mxu0  ;;  %v4013_v45 = vpop.f32.mrb[73].mxu1 }
 0x696   : > { %v2815_v46 = vpop.f32.mrb[74].mxu0  ;;  %v2861_v47 = vpop.f32.mrb[74].mxu1  ;;  %v3206_v38 = vsel %vm1614_vm3, %v2059_v33, 0  ;;  %v2062_v39 = vld [vmem:[%s5017_s16 + $0xc] sm:$0xf] }
 0x697   : > { %v4008_v48 = vpop.f32.mrb[75].mxu0  ;;  %v4014_v49 = vpop.f32.mrb[75].mxu1  ;;  %v2964_v50 = vsel %vm2960_vm7, %v2957_v41, -inf  ;;  %v2961_v43 = vsel %vm2960_vm7, %v2956_v40, -inf  ;;  %v3344_v47 = vsel %vm1614_vm3, %v2062_v39, 0 }
 0x698   : > { %2965 = vmax.xlane.f32.xlu1 %v2964_v50  ;;  %2962 = vmax.xlane.f32.xlu0 %v2961_v43 }
 0x69c   : > { %v2904_v51 = vpop.f32.mrb[76].mxu0  ;;  %v2950_v44 = vpop.f32.mrb[76].mxu1 }
 0x69d   : > { %v2958_v52 = vmul.f32 0.35355338, %v2904_v51  ;;  %v2959_v53 = vmul.f32 0.35355338, %v2950_v44  ;;  %v4019_v54 = vpop.f32.mrb[77].mxu0  ;;  %v4025_v55 = vpop.f32.mrb[77].mxu1 }
 0x69e   : > { %v2907_v56 = vpop.f32.mrb[78].mxu0  ;;  %v2953_v57 = vpop.f32.mrb[78].mxu1 }
 0x69f   : > { %v4020_v58 = vpop.f32.mrb[79].mxu0  ;;  %v4026_v60 = vpop.f32.mrb[79].mxu1  ;;  %v2970_v61 = vsel %vm2960_vm7, %v2959_v53, -inf  ;;  %v2967_v59 = vsel %vm2960_vm7, %v2958_v52, -inf }
 0x6a0   : > { %2971 = vmax.xlane.f32.xlu1 %v2970_v61  ;;  %2968 = vmax.xlane.f32.xlu0 %v2967_v59 }
 0x725   : > { %v2966_v62 = vpop.xlane.xlu1 %2965  ;;  %v2963_v63 = vpop.xlane.xlu0 %2962 }
 0x726   : > { %v2974_v0 = vsub.f32 %v2957_v41, %v2966_v62  ;;  %v2973_v2 = vsub.f32 %v2956_v40, %v2963_v63  ;;  %v2061_v40 = vld [vmem:[%s5017_s16 + $0x8] sm:$0xf] }
 0x727   : > { %v3298_v43 = vsel %vm1614_vm3, %v2061_v40, 0 }
 0x728   : > { %v2979_v3 = vmul.f32 1.442695, %v2974_v0  ;;  %v2977_v4 = vmul.f32 1.442695, %v2973_v2 }
 0x72a   : > { %4180 = vpow2.f32 %v2979_v3 }
 0x72b   : > { %4182 = vpow2.f32 %v2977_v4 }
 0x72d   : > { %v2972_v5 = vpop.xlane.xlu1 %2971  ;;  %v2969_v6 = vpop.xlane.xlu0 %2968 }
 0x72e   : > { %v2976_v7 = vsub.f32 %v2959_v53, %v2972_v5  ;;  %v2975_v8 = vsub.f32 %v2958_v52, %v2969_v6 }
 0x730   : > { %v2983_v9 = vmul.f32 1.442695, %v2976_v7  ;;  %v2981_v10 = vmul.f32 1.442695, %v2975_v8 }
 0x732   : > { %4184 = vpow2.f32 %v2983_v9 }
 0x733   : > { %4186 = vpow2.f32 %v2981_v10 }
 0x734   : > { %v4181_v11 = vpop.eup %4180 }
 0x735   : > { %v4183_v12 = vpop.eup %4182  ;;  %v2988_v13 = vsel %vm2960_vm7, %v4181_v11, 0.0 }
 0x736   : > { %2989 = vadd.xlane.f32.xlu1 %v2988_v13  ;;  %v2985_v14 = vsel %vm2960_vm7, %v4183_v12, 0.0 }
 0x737   : > { %2986 = vadd.xlane.f32.xlu0 %v2985_v14 }
 0x73c   : > { %v4185_v15 = vpop.eup %4184 }
 0x73d   : > { %v4187_v16 = vpop.eup %4186  ;;  %v2994_v17 = vsel %vm2960_vm7, %v4185_v15, 0.0 }
 0x73e   : > { %2995 = vadd.xlane.f32.xlu1 %v2994_v17  ;;  %v2991_v19 = vsel %vm2960_vm7, %v4187_v16, 0.0 }
 0x73f   : > { %2992 = vadd.xlane.f32.xlu0 %v2991_v19 }
 0x7c3   : > { %v2990_v20 = vpop.xlane.xlu1 %2989 }
 0x7c4   : > { %4188 = vrcp.f32 %v2990_v20  ;;  %v2987_v21 = vpop.xlane.xlu0 %2986  ;;  %v3614_v20 = vld [vmem:[%s5018_s17] ss:$0 sm:$0xff] }
 0x7c5   : > { %4190 = vrcp.f32 %v2987_v21 }
 0x7cb   : > { %v2996_v22 = vpop.xlane.xlu1 %2995 }
 0x7cc   : > { %4192 = vrcp.f32 %v2996_v22  ;;  %v2993_v23 = vpop.xlane.xlu0 %2992 }
 0x7cd   : > { %4194 = vrcp.f32 %v2993_v23 }
 0x7ce   : > { %v4189_v24 = vpop.eup %4188 }
 0x7cf   : > { %v4191_v25 = vpop.eup %4190  ;;  %v3002_v26 = vmul.f32 %v4189_v24, %v4181_v11 }
 0x7d0   : > { %v3001_v27 = vmul.f32 %v4191_v25, %v4183_v12 }
 0x7d1   : > { %v3006_v28 = vpack.c.bf16 %v3002_v26, %v3002_v26 }
 0x7d2   : > { %v3005_v29 = vpack.c.bf16 %v3001_v27, %v3001_v27 }
 0x7d3   : > { %4036 = vmatmul.mubr.msk.bf16.vlgmr.msra.gmra.mrb[80].mxu1 %vm2960_vm7, %v3006_v28 }
 0x7d4   : > { %4030 = vmatmul.mubr.msk.bf16.vlgmr.msra.gmra.mrb[80].mxu0 %vm2960_vm7, %v3005_v29  ;;  %4046 = vmatpush3.bf16.msra.mxu1 %v4894_v37 }
 0x7d5   : > { %4040 = vmatpush3.bf16.msra.mxu0 %v4891_v36  ;;  %4041 = vmatprep.mubr.msk.bf16.mxu0 %vm4261_vm0, %v4260_v1  ;;  %v3252_v36 = vsel %vm1614_vm3, %v2060_v31, 0 }
 0x7d6   : > { %v4193_v30 = vpop.eup %4192  ;;  %4047 = vmatprep.mubr.msk.bf16.mxu1 %vm4261_vm0, %v4260_v1  ;;  %4051 = vmatprep.subr.bf16.mxu0 %v4260_v1 }
 0x7d7   : > { %v4195_v32 = vpop.eup %4194  ;;  %v3004_v18 = vmul.f32 %v4193_v30, %v4185_v15  ;;  %4057 = vmatprep.subr.bf16.mxu1 %v4260_v1 }
 0x7d8   : > { %v3003_v34 = vmul.f32 %v4195_v32, %v4187_v16 }
 0x7d9   : > { %v3008_v35 = vpack.c.bf16 %v3004_v18, %v3004_v18 }
 0x7da   : > { %v3007_v37 = vpack.c.bf16 %v3003_v34, %v3003_v34 }
 0x7db   : > { %4048 = vmatmul.mubr.msk.bf16.vlgmr.msra.gmra.mrb[84].mxu1 %vm2960_vm7, %v3008_v35 }
 0x7dc   : > { %4042 = vmatmul.mubr.msk.bf16.vlgmr.msra.gmra.mrb[84].mxu0 %vm2960_vm7, %v3007_v37  ;;  %4058 = vmatpush3.bf16.msra.mxu1 %v3252_v36 }
 0x7dd   : > { %4052 = vmatpush3.bf16.msra.mxu0 %v3206_v38  ;;  %4053 = vmatprep.mubr.msk.bf16.mxu0 %vm4261_vm0, %v4260_v1 }
 0x7de   : > { %4059 = vmatprep.mubr.msk.bf16.mxu1 %vm4261_vm0, %v4260_v1  ;;  %4063 = vmatprep.subr.bf16.mxu0 %v4260_v1 }
 0x7df   : > { %4069 = vmatprep.subr.bf16.mxu1 %v4260_v1 }
 0x8a6   : > { %v3100_v41 = vpop.f32.mrb[80].mxu1 }
 0x8a7   : > { %v3054_v42 = vpop.f32.mrb[80].mxu0  ;;  %v3199_v45 = vpack.c.bf16 %v3100_v41, %v3100_v41  ;;  %v4037_v46 = vpop.f32.mrb[81].mxu1 }
 0x8a8   : > { %v3198_v48 = vpack.c.bf16 %v3054_v42, %v3054_v42  ;;  %v4031_v49 = vpop.f32.mrb[81].mxu0  ;;  %v3103_v50 = vpop.f32.mrb[82].mxu1 }
 0x8a9   : > { %v3057_v51 = vpop.f32.mrb[82].mxu0  ;;  %v4038_v44 = vpop.f32.mrb[83].mxu1  ;;  %4060 = vmatmul.mubr.msk.bf16.vlgmr.msra.gmra.mrb[88].mxu1 %vm1369_vm2, %v3199_v45 }
 0x8aa   : > { %v4032_v52 = vpop.f32.mrb[83].mxu0  ;;  %4054 = vmatmul.mubr.msk.bf16.vlgmr.msra.gmra.mrb[88].mxu0 %vm1369_vm2, %v3198_v48  ;;  %4070 = vmatpush3.bf16.msra.mxu1 %v3344_v47 }
 0x8ab   : > { %4064 = vmatpush3.bf16.msra.mxu0 %v3298_v43  ;;  %4065 = vmatprep.mubr.msk.bf16.mxu0 %vm4261_vm0, %v4260_v1 }
 0x8ac   : > { %4071 = vmatprep.mubr.msk.bf16.mxu1 %vm4261_vm0, %v4260_v1 }
 0x8ae   : > { %v3192_v53 = vpop.f32.mrb[84].mxu1 }
 0x8af   : > { %v3146_v54 = vpop.f32.mrb[84].mxu0  ;;  %v3201_v55 = vpack.c.bf16 %v3192_v53, %v3192_v53  ;;  %v4049_v56 = vpop.f32.mrb[85].mxu1 }
 0x8b0   : > { %v3200_v57 = vpack.c.bf16 %v3146_v54, %v3146_v54  ;;  %v4043_v58 = vpop.f32.mrb[85].mxu0  ;;  %v3195_v60 = vpop.f32.mrb[86].mxu1 }
 0x8b1   : > { %v3149_v61 = vpop.f32.mrb[86].mxu0  ;;  %v4050_v59 = vpop.f32.mrb[87].mxu1  ;;  %4072 = vmatmul.mubr.msk.bf16.vlgmr.msra.gmra.mrb[92].mxu1 %vm1369_vm2, %v3201_v55 }
 0x8b2   : > { %v4044_v62 = vpop.f32.mrb[87].mxu0  ;;  %4066 = vmatmul.mubr.msk.bf16.vlgmr.msra.gmra.mrb[92].mxu0 %vm1369_vm2, %v3200_v57 }
 0x97c   : > { %v3288_v63 = vpop.f32.mrb[88].mxu1 }
 0x97d   : > { %v3242_v0 = vpop.f32.mrb[88].mxu0  ;;  %v3387_v2 = vsel %vm694_vm1, %v3288_v63, 0.0  ;;  %v4061_v1 = vpop.f32.mrb[89].mxu1 }
 0x97e   : > { %v3386_v3 = vsel %vm694_vm1, %v3242_v0, 0.0  ;;  %v4055_v4 = vpop.f32.mrb[89].mxu0  ;;  %v3291_v5 = vpop.f32.mrb[90].mxu1 }
 0x97f   : > { %v3388_v6 = vadd.f32 %v3387_v2, %v3386_v3  ;;  %v3245_v7 = vpop.f32.mrb[90].mxu0  ;;  %v4062_v8 = vpop.f32.mrb[91].mxu1 }
 0x980   : > { %v4056_v9 = vpop.f32.mrb[91].mxu0 }
 0x984   : > { %v3380_v10 = vpop.f32.mrb[92].mxu1 }
 0x985   : > { %v3334_v11 = vpop.f32.mrb[92].mxu0  ;;  %v4073_v12 = vpop.f32.mrb[93].mxu1  ;;  %v3391_v21 = vsel %vm694_vm1, %v3380_v10, 0.0 }
 0x986   : > { %v3389_v13 = vsel %vm694_vm1, %v3334_v11, 0.0  ;;  %v4067_v14 = vpop.f32.mrb[93].mxu0  ;;  %v3383_v15 = vpop.f32.mrb[94].mxu1 }
 0x987   : > { %v3390_v16 = vadd.f32 %v3389_v13, %v3388_v6  ;;  %v3337_v17 = vpop.f32.mrb[94].mxu0  ;;  %v4074_v19 = vpop.f32.mrb[95].mxu1 }
 0x988   : > { %v4068_v22 = vpop.f32.mrb[95].mxu0 }
 0x989   : > { %v3392_v23 = vadd.f32 %v3391_v21, %v3390_v16 }
 0x98b   : > { %v3399_v24 = vadd.f32 %v3614_v20, %v3392_v23 }
 0x98d   : > { %3400 = vst.msk [vmem:[%s579_s26] sm:$0xff] %vm694_vm1, %v3399_v24 }
 0x98e   : > { %4209 = shalt.err (!%p4206_p3)
}
 0x98f   : > { %s4210_s22 = scalar_lea.hbm %s4958_s25, 128  ;;  %s4214_s24 = scalar_lea.hbm %s5019_s18, 256 }
 0x990   : > { %p4211_p4 = scmp.ne.s32.totalorder %s4958_s25, %s4210_s22  ;;  %p4215_p9 = scmp.lt.u32.totalorder %s4958_s25, %s5019_s18 }
 0x991   : > { %p4216_p10 = scmp.lt.u32.totalorder %s4214_s24, %s4210_s22  ;;  %p4218_p12 = scmp.lt.u32.totalorder %s4210_s22, %s4958_s25 }
 0x992   : > { %p4212_p7 = pnand %p4211_p4, %p4396_p5 }
 0x993   : > { %p4217_p11 = por %p4216_p10, %p4215_p9 }
 0x994   : > { %p4213_p8 = pneg %p4212_p7 }
 0x995   : > { %p4219_p13 = por %p4218_p12, %p4217_p11 }
 0x997   : > { %p4220_p0 = pnand %p4219_p13, %p4213_p8 }
 0x999   : > { %4223 = shalt.err (!%p4220_p0)
}
 0x99a   : > { %4075 = dma.vmem_to_hbm [thread:$0]  (%p4396_p5), %s4960_s23, 128, %s4958_s25, %s3402_s29  }
 0x99b PF: > { %s5040_s21 = sld [smem:[#allocation5_spill]]  ;;  %p4081_p1 = scmp.ge.s32.totalorder %s4258_s30, 2 }
 0x99d   : > { %p4078_p2 = pnand %p4081_p1, %p4400_p6 }
 0x9a1   : > { %s3427_s1 = sand.u32 1, %s5040_s21  }
 0x9a2   : > { %s3428_s27 = scalar_lea.sflag [#allocation3], %s3427_s1 }
 0x9a3   : > { %4241 = dma.done.wait (!%p4078_p2), %s3428_s27, 128  }
 0x9a4   : > { %4243 = vsyncadd (!%p4078_p2), %s3428_s27, 4294967168  ;;  %s5042_s30 = sld [smem:[#allocation7_spill]]  ;;  %s5043_s22 = sld [smem:[#allocation6_spill]] }
 0x9a5   : > { %s5044_s29 = sld [smem:[#allocation8_spill]]  ;;  %s5045_s27 = smov %s4250_s28 }
 0x9aa   : > { %p28_p3 = scmp.ge.s32.totalorder %s5042_s30, 4   ;;  %s5046_s28 = smov %s5043_s22 }
 0x9ac   :  { %30 = sbr.rel (!%p28_p3) target bundleno = 7 (0x7), region = 130 }
 0x9b3   :  { %3433 = vsyncpa [#allocation3], 1 }
 0x9b4   :  { %3435 = vsyncpa [#allocation3 + $0x1], 1 }

</bundles_post_ra>
